<compile_context>
chip_gen: v7x
topology: tpu7x:2x2x1
jax: 0.10.0
libtpu: 0.0.40
codegen_flags: <defaults>
</compile_context>

<pallas_src>
import functools

import numpy as np
import jax
import jax.numpy as jnp
from jax import lax
from jax.experimental import pallas as pl
from jax.experimental.pallas import tpu as pltpu


def _round_up(x, m):
    return (x + m - 1) // m * m


# ----------------------------------------------------------------------------------
# Pass 1: layer-1 1x1 conv (MXU matmul) + cross-image BatchNorm statistics.
# ----------------------------------------------------------------------------------
def _conv1x1_stats_kernel(x_ref, w_ref, g_ref, b_ref,
                          y_ref, scale_ref, shift_ref,
                          sum_ref, ssq_ref, *, count, eps):
    n = pl.program_id(0)

    @pl.when(n == 0)
    def _init():
        sum_ref[...] = jnp.zeros_like(sum_ref)
        ssq_ref[...] = jnp.zeros_like(ssq_ref)

    xb = x_ref[0].astype(jnp.bfloat16)                                    # (C, L) bf16 for MXU
    y = jnp.dot(w_ref[...], xb, preferred_element_type=jnp.float32)      # (C2, L) f32 accum
    y_ref[0] = y

    # Invalid canvas positions (pad ring + lane tail) hold x == 0, hence y == 0, so the
    # unmasked lane reduction is exact; only `count` must exclude them.
    sum_ref[...] += jnp.sum(y, axis=1, keepdims=True)
    ssq_ref[...] += jnp.sum(y * y, axis=1, keepdims=True)

    @pl.when(n == pl.num_programs(0) - 1)
    def _finalize():
        mean = sum_ref[...] * (1.0 / count)
        var = jnp.maximum(ssq_ref[...] * (1.0 / count) - mean * mean, 0.0)
        rstd = lax.rsqrt(var + eps)
        scale = g_ref[...] * rstd
        scale_ref[...] = scale
        shift_ref[...] = b_ref[...] - mean * scale


# ----------------------------------------------------------------------------------
# Pass 2: layer-1 BN apply + LeakyReLU, fused with the 3x3 conv (9 shifted MXU
# matmuls, VMEM im2col) + cross-image BatchNorm statistics for layer 2.
# ----------------------------------------------------------------------------------
def _conv3x3_stats_kernel(y1_ref, s1_ref, t1_ref, m1_ref, w2_ref, g_ref, b_ref, m2_ref,
                          y2_ref, scale_ref, shift_ref,
                          sum_ref, ssq_ref, *, wp, spr, neg_slope, count, eps):
    n = pl.program_id(0)

    @pl.when(n == 0)
    def _init():
        sum_ref[...] = jnp.zeros_like(sum_ref)
        ssq_ref[...] = jnp.zeros_like(ssq_ref)

    # Fused layer-1 epilogue: BN affine + LeakyReLU (f32), then zero the pad ring and
    # garbage lanes so they act as the 3x3 conv's zero padding.
    z = y1_ref[0] * s1_ref[...] + t1_ref[...]                             # (C2, L) f32
    a1 = jnp.where(z > 0, z, neg_slope * z) * m1_ref[...]

    oc = y2_ref.shape[1]
    acc = jnp.zeros((oc, spr), jnp.float32)
    for kh in range(3):                                                   # static unroll: 9 taps
        for kw in range(3):
            d = kh * wp + kw
            tap = a1[:, d:d + spr].astype(jnp.bfloat16)                   # shifted view in VMEM
            acc = acc + jnp.dot(w2_ref[kh * 3 + kw], tap,
                                preferred_element_type=jnp.float32)
    y2_ref[0] = acc

    m2 = m2_ref[...]
    sum_ref[...] += jnp.sum(acc * m2, axis=1, keepdims=True)
    ssq_ref[...] += jnp.sum(acc * acc * m2, axis=1, keepdims=True)

    @pl.when(n == pl.num_programs(0) - 1)
    def _finalize():
        mean = sum_ref[...] * (1.0 / count)
        var = jnp.maximum(ssq_ref[...] * (1.0 / count) - mean * mean, 0.0)
        rstd = lax.rsqrt(var + eps)
        scale = g_ref[...] * rstd
        scale_ref[...] = scale
        shift_ref[...] = b_ref[...] - mean * scale


# ----------------------------------------------------------------------------------
# Pass 3: layer-2 BN apply + LeakyReLU + residual add (pure elementwise, parallel).
# ----------------------------------------------------------------------------------
def _bn_act_residual_kernel(y2_ref, s_ref, t_ref, x_ref, o_ref, *, wp, spr, neg_slope):
    z = y2_ref[0] * s_ref[...] + t_ref[...]
    act = jnp.where(z > 0, z, neg_slope * z)
    # Layer-2's output at flat canvas index t corresponds to the input pixel at canvas
    # index t + WP + 1 (output anchored at the top-left of its 3x3 window, input sits one
    # ring inside the padded canvas) -> residual add via a static shifted slice.
    o_ref[0] = act + x_ref[0][:, wp + 1:wp + 1 + spr]


def residual_layer_forward(x, w1, g1, b1, w2, g2, b2, *, eps=1e-5, negative_slope=0.1):
    """ResidualLayer forward: x + LReLU(BN(conv3x3(LReLU(BN(conv1x1(x)))))).

    x: (N, C, H, W) f32 NCHW.  w1: (C//2, C, 1, 1).  w2: (C, C//2, 3, 3).
    """
    N, C, H, W = x.shape
    C2 = w1.shape[0]
    assert w1.shape == (C2, C, 1, 1) and w2.shape == (C, C2, 3, 3)

    HP, WP = H + 2, W + 2
    SP = HP * WP                                   # flat padded-canvas size per image
    SPR = _round_up(SP, 128)                       # lane-dense layer-2 output width
    L = _round_up(SPR + 2 * WP + 2, 128)           # canvas width incl. shift halo
    count = float(N * H * W)                       # BN population size (valid pixels only)

    # ---- plain-JAX prep: one zero-pad pass, no transposes, no HBM im2col ----
    xpad = jnp.pad(x.astype(jnp.float32), ((0, 0), (0, 0), (1, 1), (1, 1)))
    xpad = jnp.pad(xpad.reshape(N, C, SP), ((0, 0), (0, 0), (0, L - SP)))   # (N, C, L)

    w1_2d = w1.reshape(C2, C).astype(jnp.bfloat16)
    w2_taps = jnp.transpose(w2, (2, 3, 0, 1)).reshape(9, C, C2).astype(jnp.bfloat16)
    g1c = g1.reshape(C2, 1).astype(jnp.float32)
    b1c = b1.reshape(C2, 1).astype(jnp.float32)
    g2c = g2.reshape(C, 1).astype(jnp.float32)
    b2c = b2.reshape(C, 1).astype(jnp.float32)

    # Static validity masks over the flat canvas (host-side constants).
    t1 = np.arange(L)
    r1, c1 = t1 // WP, t1 % WP
    mask1 = ((r1 >= 1) & (r1 <= H) & (c1 >= 1) & (c1 <= W)).astype(np.float32)[None, :]
    t2 = np.arange(SPR)
    r2, c2 = t2 // WP, t2 % WP
    mask2 = ((r2 < H) & (c2 < W)).astype(np.float32)[None, :]
    mask1 = jnp.asarray(mask1)
    mask2 = jnp.asarray(mask2)

    # ---- pass 1: conv1x1 matmul + layer-1 BN stats ----
    y1, scale1, shift1 = pl.pallas_call(
        functools.partial(_conv1x1_stats_kernel, count=count, eps=eps),
        grid=(N,),
        in_specs=[
            pl.BlockSpec((1, C, L), lambda n: (n, 0, 0)),
            pl.BlockSpec((C2, C), lambda n: (0, 0)),
            pl.BlockSpec((C2, 1), lambda n: (0, 0)),
            pl.BlockSpec((C2, 1), lambda n: (0, 0)),
        ],
        out_specs=[
            pl.BlockSpec((1, C2, L), lambda n: (n, 0, 0)),
            pl.BlockSpec((C2, 1), lambda n: (0, 0)),
            pl.BlockSpec((C2, 1), lambda n: (0, 0)),
        ],
        out_shape=[
            jax.ShapeDtypeStruct((N, C2, L), jnp.float32),
            jax.ShapeDtypeStruct((C2, 1), jnp.float32),
            jax.ShapeDtypeStruct((C2, 1), jnp.float32),
        ],
        scratch_shapes=[pltpu.VMEM((C2, 1), jnp.float32),
                        pltpu.VMEM((C2, 1), jnp.float32)],
        compiler_params=pltpu.CompilerParams(dimension_semantics=("arbitrary",)),
    )(xpad, w1_2d, g1c, b1c)

    # ---- pass 2: layer-1 BN/LReLU apply fused with conv3x3 + layer-2 BN stats ----
    y2, scale2, shift2 = pl.pallas_call(
        functools.partial(_conv3x3_stats_kernel, wp=WP, spr=SPR,
                          neg_slope=negative_slope, count=count, eps=eps),
        grid=(N,),
        in_specs=[
            pl.BlockSpec((1, C2, L), lambda n: (n, 0, 0)),
            pl.BlockSpec((C2, 1), lambda n: (0, 0)),
            pl.BlockSpec((C2, 1), lambda n: (0, 0)),
            pl.BlockSpec((1, L), lambda n: (0, 0)),
            pl.BlockSpec((9, C, C2), lambda n: (0, 0, 0)),
            pl.BlockSpec((C, 1), lambda n: (0, 0)),
            pl.BlockSpec((C, 1), lambda n: (0, 0)),
            pl.BlockSpec((1, SPR), lambda n: (0, 0)),
        ],
        out_specs=[
            pl.BlockSpec((1, C, SPR), lambda n: (n, 0, 0)),
            pl.BlockSpec((C, 1), lambda n: (0, 0)),
            pl.BlockSpec((C, 1), lambda n: (0, 0)),
        ],
        out_shape=[
            jax.ShapeDtypeStruct((N, C, SPR), jnp.float32),
            jax.ShapeDtypeStruct((C, 1), jnp.float32),
            jax.ShapeDtypeStruct((C, 1), jnp.float32),
        ],
        scratch_shapes=[pltpu.VMEM((C, 1), jnp.float32),
                        pltpu.VMEM((C, 1), jnp.float32)],
        compiler_params=pltpu.CompilerParams(dimension_semantics=("arbitrary",)),
    )(y1, scale1, shift1, mask1, w2_taps, g2c, b2c, mask2)

    # ---- pass 3: layer-2 BN/LReLU apply + residual add ----
    outp = pl.pallas_call(
        functools.partial(_bn_act_residual_kernel, wp=WP, spr=SPR,
                          neg_slope=negative_slope),
        grid=(N,),
        in_specs=[
            pl.BlockSpec((1, C, SPR), lambda n: (n, 0, 0)),
            pl.BlockSpec((C, 1), lambda n: (0, 0)),
            pl.BlockSpec((C, 1), lambda n: (0, 0)),
            pl.BlockSpec((1, C, L), lambda n: (n, 0, 0)),
        ],
        out_specs=pl.BlockSpec((1, C, SPR), lambda n: (n, 0, 0)),
        out_shape=jax.ShapeDtypeStruct((N, C, SPR), jnp.float32),
        compiler_params=pltpu.CompilerParams(dimension_semantics=("parallel",)),
    )(y2, scale2, shift2, xpad)

    # Drop the canvas's pad/garbage columns & rows -> NCHW output.
    out = outp[:, :, :SP].reshape(N, C, HP, WP)[:, :, :H, :W]
    return out


# ----------------------------------------------------------------------------------
# Plain-JAX references (PyTorch training-mode forward semantics).
# ----------------------------------------------------------------------------------
def _conv_bn_lrelu_ref(x, w, gamma, beta, *, stride, padding, eps, neg_slope, conv_dtype):
    y = lax.conv_general_dilated(
        x.astype(conv_dtype), w.astype(conv_dtype),
        window_strides=(stride, stride),
        padding=((padding, padding), (padding, padding)),
        dimension_numbers=("NCHW", "OIHW", "NCHW"),
        preferred_element_type=jnp.float32)
    mean = jnp.mean(y, axis=(0, 2, 3), keepdims=True)
    var = jnp.mean((y - mean) ** 2, axis=(0, 2, 3), keepdims=True)
    yb = (y - mean) * lax.rsqrt(var + eps) * gamma.reshape(1, -1, 1, 1) + beta.reshape(1, -1, 1, 1)
    return jnp.where(yb > 0, yb, neg_slope * yb)


def _residual_layer_ref(x, w1, g1, b1, w2, g2, b2, *, eps=1e-5, neg_slope=0.1,
                        conv_dtype=jnp.float32):
    a1 = _conv_bn_lrelu_ref(x.astype(jnp.float32), w1, g1, b1, stride=1, padding=0,
                            eps=eps, neg_slope=neg_slope, conv_dtype=conv_dtype)
    a2 = _conv_bn_lrelu_ref(a1, w2, g2, b2, stride=1, padding=1,
                            eps=eps, neg_slope=neg_slope, conv_dtype=conv_dtype)
    return x + a2


if __name__ == "__main__":
    # Small shapes consistent with ResidualLayer(in_channels=8): 8 -> 4 (1x1) -> 8 (3x3).
    N, C, H, W = 2, 8, 16, 16
    C2 = C // 2

    key = jax.random.PRNGKey(0)
    kx, kw1, kw2, kg1, kb1, kg2, kb2 = jax.random.split(key, 7)
    x = jax.random.normal(kx, (N, C, H, W), dtype=jnp.float32)
    w1 = 0.1 * jax.random.normal(kw1, (C2, C, 1, 1), dtype=jnp.float32)
    w2 = 0.1 * jax.random.normal(kw2, (C, C2, 3, 3), dtype=jnp.float32)
    g1 = 1.0 + 0.1 * jax.random.normal(kg1, (C2,), dtype=jnp.float32)
    b1 = 0.1 * jax.random.normal(kb1, (C2,), dtype=jnp.float32)
    g2 = 1.0 + 0.1 * jax.random.normal(kg2, (C,), dtype=jnp.float32)
    b2 = 0.1 * jax.random.normal(kb2, (C,), dtype=jnp.float32)

    fwd = jax.jit(residual_layer_forward)
    out = jax.block_until_ready(fwd(x, w1, g1, b1, w2, g2, b2))
    assert out.shape == (N, C, H, W), out.shape

    # Reference at the same MXU precision (bf16 conv operands, f32 accumulation).
    ref_bf16 = _residual_layer_ref(x, w1, g1, b1, w2, g2, b2, conv_dtype=jnp.bfloat16)
    err_bf16 = float(jnp.max(jnp.abs(out - ref_bf16)))
    assert jnp.allclose(out, ref_bf16, atol=1e-2, rtol=1e-2), err_bf16

    # Loose sanity check vs the pure-f32 PyTorch-exact forward (the kernel intentionally
    # feeds the MXU bf16 operands, per the v5e/v6e/v7x guidance).
    ref_f32 = _residual_layer_ref(x, w1, g1, b1, w2, g2, b2, conv_dtype=jnp.float32)
    err_f32 = float(jnp.max(jnp.abs(out - ref_f32)))
    assert err_f32 < 0.25, err_f32

    print("KERNEL_OK")
</pallas_src>

<mosaic_0001>
module attributes {stable_mosaic.version = 11 : i64} {
  func.func @_bn_act_residual_kernel(%arg0: i32, %arg1: memref<1x8x384xf32, #tpu.memory_space<vmem>>, %arg2: memref<8x1xf32, #tpu.memory_space<vmem>>, %arg3: memref<8x1xf32, #tpu.memory_space<vmem>>, %arg4: memref<1x8x512xf32, #tpu.memory_space<vmem>>, %arg5: memref<1x8x384xf32, #tpu.memory_space<vmem>>) attributes {dimension_semantics = [#tpu.dimension_semantics<parallel>], iteration_bounds = array<i64: 2>, scalar_prefetch = 0 : i64, scratch_operands = 0 : i64, tpu.core_type = #tpu.core_type<tc>, window_params = [{transform_indices = @transform_0, window_bounds = array<i64: 1, 8, 384>}, {pipeline_mode = #tpu.pipeline_mode<synchronous>, transform_indices = @transform_1, window_bounds = array<i64: 8, 1>}, {pipeline_mode = #tpu.pipeline_mode<synchronous>, transform_indices = @transform_2, window_bounds = array<i64: 8, 1>}, {transform_indices = @transform_3, window_bounds = array<i64: 1, 8, 512>}, {transform_indices = @transform_4, window_bounds = array<i64: 1, 8, 384>}]} {
    %c0 = arith.constant 0 : index
    %c0_0 = arith.constant 0 : index
    %c0_1 = arith.constant 0 : index
    %0 = vector.load %arg1[%c0, %c0_0, %c0_1] : memref<1x8x384xf32, #tpu.memory_space<vmem>>, vector<1x8x384xf32>
    %1 = vector.shape_cast %0 : vector<1x8x384xf32> to vector<8x384xf32>
    %c0_2 = arith.constant 0 : index
    %c0_3 = arith.constant 0 : index
    %2 = vector.load %arg2[%c0_2, %c0_3] : memref<8x1xf32, #tpu.memory_space<vmem>>, vector<8x1xf32>
    %3 = vector.broadcast %2 : vector<8x1xf32> to vector<8x384xf32>
    %4 = arith.mulf %1, %3 : vector<8x384xf32>
    %c0_4 = arith.constant 0 : index
    %c0_5 = arith.constant 0 : index
    %5 = vector.load %arg3[%c0_4, %c0_5] : memref<8x1xf32, #tpu.memory_space<vmem>>, vector<8x1xf32>
    %6 = vector.broadcast %5 : vector<8x1xf32> to vector<8x384xf32>
    %7 = arith.addf %4, %6 : vector<8x384xf32>
    %cst = arith.constant 0.000000e+00 : f32
    %8 = vector.broadcast %cst : f32 to vector<8x384xf32>
    %9 = arith.cmpf ogt, %7, %8 : vector<8x384xf32>
    %cst_6 = arith.constant 1.000000e-01 : f32
    %10 = vector.broadcast %cst_6 : f32 to vector<8x384xf32>
    %11 = arith.mulf %10, %7 : vector<8x384xf32>
    %12 = arith.select %9, %7, %11 : vector<8x384xi1>, vector<8x384xf32>
    %c0_7 = arith.constant 0 : index
    %c0_8 = arith.constant 0 : index
    %c0_9 = arith.constant 0 : index
    %13 = vector.load %arg4[%c0_7, %c0_8, %c0_9] : memref<1x8x512xf32, #tpu.memory_space<vmem>>, vector<1x8x512xf32>
    %14 = vector.shape_cast %13 : vector<1x8x512xf32> to vector<8x512xf32>
    %15 = vector.extract_strided_slice %14 {offsets = [0, 19], sizes = [8, 384], strides = [1, 1]} : vector<8x512xf32> to vector<8x384xf32>
    %16 = arith.addf %12, %15 : vector<8x384xf32>
    %c0_10 = arith.constant 0 : index
    %c0_11 = arith.constant 0 : index
    %c0_12 = arith.constant 0 : index
    %17 = vector.load %arg5[%c0_10, %c0_11, %c0_12] : memref<1x8x384xf32, #tpu.memory_space<vmem>>, vector<1x8x384xf32>
    %18 = vector.shape_cast %17 : vector<1x8x384xf32> to vector<8x384xf32>
    %19 = vector.shape_cast %16 : vector<8x384xf32> to vector<1x8x384xf32>
    tpu.vector_store %arg5[%c0_10, %c0_11, %c0_12], %19 {strides = array<i32>} : memref<1x8x384xf32, #tpu.memory_space<vmem>>, vector<1x8x384xf32>,
    return
  }
  func.func @transform_0(%arg0: i32) -> (i32, i32, i32) {
    %c0_i32 = arith.constant 0 : i32
    %c0_i32_0 = arith.constant 0 : i32
    %c0_i32_1 = arith.constant 0 : i32
    return %arg0, %c0_i32, %c0_i32_0 : i32, i32, i32
  }
  func.func @transform_1(%arg0: i32) -> (i32, i32) {
    %c0_i32 = arith.constant 0 : i32
    %c0_i32_0 = arith.constant 0 : i32
    %c0_i32_1 = arith.constant 0 : i32
    return %c0_i32, %c0_i32_0 : i32, i32
  }
  func.func @transform_2(%arg0: i32) -> (i32, i32) {
    %c0_i32 = arith.constant 0 : i32
    %c0_i32_0 = arith.constant 0 : i32
    %c0_i32_1 = arith.constant 0 : i32
    return %c0_i32, %c0_i32_0 : i32, i32
  }
  func.func @transform_3(%arg0: i32) -> (i32, i32, i32) {
    %c0_i32 = arith.constant 0 : i32
    %c0_i32_0 = arith.constant 0 : i32
    %c0_i32_1 = arith.constant 0 : i32
    return %arg0, %c0_i32, %c0_i32_0 : i32, i32, i32
  }
  func.func @transform_4(%arg0: i32) -> (i32, i32, i32) {
    %c0_i32 = arith.constant 0 : i32
    %c0_i32_0 = arith.constant 0 : i32
    %c0_i32_1 = arith.constant 0 : i32
    return %arg0, %c0_i32, %c0_i32_0 : i32, i32, i32
  }
}

module attributes {stable_mosaic.version = 11 : i64} {
  func.func @_conv1x1_stats_kernel(%arg0: i32, %arg1: memref<1x8x512xf32, #tpu.memory_space<vmem>>, %arg2: memref<4x8xbf16, #tpu.memory_space<vmem>>, %arg3: memref<4x1xf32, #tpu.memory_space<vmem>>, %arg4: memref<4x1xf32, #tpu.memory_space<vmem>>, %arg5: memref<1x4x512xf32, #tpu.memory_space<vmem>>, %arg6: memref<4x1xf32, #tpu.memory_space<vmem>>, %arg7: memref<4x1xf32, #tpu.memory_space<vmem>>, %arg8: memref<4x1xf32, #tpu.memory_space<vmem>>, %arg9: memref<4x1xf32, #tpu.memory_space<vmem>>) attributes {dimension_semantics = [#tpu.dimension_semantics<arbitrary>], iteration_bounds = array<i64: 2>, scalar_prefetch = 0 : i64, scratch_operands = 2 : i64, tpu.core_type = #tpu.core_type<tc>, window_params = [{transform_indices = @transform_0, window_bounds = array<i64: 1, 8, 512>}, {pipeline_mode = #tpu.pipeline_mode<synchronous>, transform_indices = @transform_1, window_bounds = array<i64: 4, 8>}, {pipeline_mode = #tpu.pipeline_mode<synchronous>, transform_indices = @transform_2, window_bounds = array<i64: 4, 1>}, {pipeline_mode = #tpu.pipeline_mode<synchronous>, transform_indices = @transform_3, window_bounds = array<i64: 4, 1>}, {transform_indices = @transform_4, window_bounds = array<i64: 1, 4, 512>}, {pipeline_mode = #tpu.pipeline_mode<synchronous>, transform_indices = @transform_5, window_bounds = array<i64: 4, 1>}, {pipeline_mode = #tpu.pipeline_mode<synchronous>, transform_indices = @transform_6, window_bounds = array<i64: 4, 1>}]} {
    %c0_i32 = arith.constant 0 : i32
    %0 = arith.cmpi eq, %arg0, %c0_i32 : i32
    %1 = arith.extui %0 : i1 to i32
    %c0_i32_0 = arith.constant 0 : i32
    %2 = arith.cmpi ne, %1, %c0_i32_0 : i32
    scf.if %2 {
      %cst_19 = arith.constant 0.000000e+00 : f32
      %25 = vector.broadcast %cst_19 : f32 to vector<4x1xf32>
      %c0_20 = arith.constant 0 : index
      %c0_21 = arith.constant 0 : index
      %26 = vector.load %arg8[%c0_20, %c0_21] : memref<4x1xf32, #tpu.memory_space<vmem>>, vector<4x1xf32>
      tpu.vector_store %arg8[%c0_20, %c0_21], %25 {strides = array<i32>} : memref<4x1xf32, #tpu.memory_space<vmem>>, vector<4x1xf32>,
      %cst_22 = arith.constant 0.000000e+00 : f32
      %27 = vector.broadcast %cst_22 : f32 to vector<4x1xf32>
      %c0_23 = arith.constant 0 : index
      %c0_24 = arith.constant 0 : index
      %28 = vector.load %arg9[%c0_23, %c0_24] : memref<4x1xf32, #tpu.memory_space<vmem>>, vector<4x1xf32>
      tpu.vector_store %arg9[%c0_23, %c0_24], %27 {strides = array<i32>} : memref<4x1xf32, #tpu.memory_space<vmem>>, vector<4x1xf32>,
    } else {
    }
    %c0 = arith.constant 0 : index
    %c0_1 = arith.constant 0 : index
    %c0_2 = arith.constant 0 : index
    %3 = vector.load %arg1[%c0, %c0_1, %c0_2] : memref<1x8x512xf32, #tpu.memory_space<vmem>>, vector<1x8x512xf32>
    %4 = vector.shape_cast %3 : vector<1x8x512xf32> to vector<8x512xf32>
    %5 = arith.truncf %4 : vector<8x512xf32> to vector<8x512xbf16>
    %c0_3 = arith.constant 0 : index
    %c0_4 = arith.constant 0 : index
    %6 = vector.load %arg2[%c0_3, %c0_4] : memref<4x8xbf16, #tpu.memory_space<vmem>>, vector<4x8xbf16>
    %cst = arith.constant dense<0.000000e+00> : vector<4x512xf32>
    %7 = tpu.matmul %6, %5, %cst {dimension_numbers = #tpu.dot_dimension_numbers<[1], [0], [0], [1], [0, 0, 1, 1], [], []>} : vector<4x8xbf16>, vector<8x512xbf16>, vector<4x512xf32> -> vector<4x512xf32>
    %c0_5 = arith.constant 0 : index
    %c0_6 = arith.constant 0 : index
    %c0_7 = arith.constant 0 : index
    %8 = vector.load %arg5[%c0_5, %c0_6, %c0_7] : memref<1x4x512xf32, #tpu.memory_space<vmem>>, vector<1x4x512xf32>
    %9 = vector.shape_cast %8 : vector<1x4x512xf32> to vector<4x512xf32>
    %10 = vector.shape_cast %7 : vector<4x512xf32> to vector<1x4x512xf32>
    tpu.vector_store %arg5[%c0_5, %c0_6, %c0_7], %10 {strides = array<i32>} : memref<1x4x512xf32, #tpu.memory_space<vmem>>, vector<1x4x512xf32>,
    %c0_8 = arith.constant 0 : index
    %c0_9 = arith.constant 0 : index
    %11 = vector.load %arg8[%c0_8, %c0_9] : memref<4x1xf32, #tpu.memory_space<vmem>>, vector<4x1xf32>
    %cst_10 = arith.constant dense<0.000000e+00> : vector<4xf32>
    %12 = vector.multi_reduction <add>, %7, %cst_10 [1] : vector<4x512xf32> to vector<4xf32>
    %13 = vector.shape_cast %12 : vector<4xf32> to vector<4x1xf32>
    %14 = arith.addf %11, %13 : vector<4x1xf32>
    %c0_11 = arith.constant 0 : index
    %c0_12 = arith.constant 0 : index
    %15 = vector.load %arg8[%c0_11, %c0_12] : memref<4x1xf32, #tpu.memory_space<vmem>>, vector<4x1xf32>
    tpu.vector_store %arg8[%c0_11, %c0_12], %14 {strides = array<i32>} : memref<4x1xf32, #tpu.memory_space<vmem>>, vector<4x1xf32>,
    %c0_13 = arith.constant 0 : index
    %c0_14 = arith.constant 0 : index
    %16 = vector.load %arg9[%c0_13, %c0_14] : memref<4x1xf32, #tpu.memory_space<vmem>>, vector<4x1xf32>
    %17 = arith.mulf %7, %7 : vector<4x512xf32>
    %cst_15 = arith.constant dense<0.000000e+00> : vector<4xf32>
    %18 = vector.multi_reduction <add>, %17, %cst_15 [1] : vector<4x512xf32> to vector<4xf32>
    %19 = vector.shape_cast %18 : vector<4xf32> to vector<4x1xf32>
    %20 = arith.addf %16, %19 : vector<4x1xf32>
    %c0_16 = arith.constant 0 : index
    %c0_17 = arith.constant 0 : index
    %21 = vector.load %arg9[%c0_16, %c0_17] : memref<4x1xf32, #tpu.memory_space<vmem>>, vector<4x1xf32>
    tpu.vector_store %arg9[%c0_16, %c0_17], %20 {strides = array<i32>} : memref<4x1xf32, #tpu.memory_space<vmem>>, vector<4x1xf32>,
    %c1_i32 = arith.constant 1 : i32
    %22 = arith.cmpi eq, %arg0, %c1_i32 : i32
    %23 = arith.extui %22 : i1 to i32
    %c0_i32_18 = arith.constant 0 : i32
    %24 = arith.cmpi ne, %23, %c0_i32_18 : i32
    scf.if %24 {
      %c0_19 = arith.constant 0 : index
      %c0_20 = arith.constant 0 : index
      %25 = vector.load %arg8[%c0_19, %c0_20] : memref<4x1xf32, #tpu.memory_space<vmem>>, vector<4x1xf32>
      %cst_21 = arith.constant 0.001953125 : f32
      %26 = vector.broadcast %cst_21 : f32 to vector<4x1xf32>
      %27 = arith.mulf %25, %26 : vector<4x1xf32>
      %c0_22 = arith.constant 0 : index
      %c0_23 = arith.constant 0 : index
      %28 = vector.load %arg9[%c0_22, %c0_23] : memref<4x1xf32, #tpu.memory_space<vmem>>, vector<4x1xf32>
      %cst_24 = arith.constant 0.001953125 : f32
      %29 = vector.broadcast %cst_24 : f32 to vector<4x1xf32>
      %30 = arith.mulf %28, %29 : vector<4x1xf32>
      %31 = arith.mulf %27, %27 : vector<4x1xf32>
      %32 = arith.subf %30, %31 : vector<4x1xf32>
      %cst_25 = arith.constant 0.000000e+00 : f32
      %33 = vector.broadcast %cst_25 : f32 to vector<4x1xf32>
      %34 = arith.maximumf %32, %33 : vector<4x1xf32>
      %cst_26 = arith.constant 9.99999974E-6 : f32
      %35 = vector.broadcast %cst_26 : f32 to vector<4x1xf32>
      %36 = arith.addf %34, %35 : vector<4x1xf32>
      %37 = math.rsqrt %36 : vector<4x1xf32>
      %c0_27 = arith.constant 0 : index
      %c0_28 = arith.constant 0 : index
      %38 = vector.load %arg3[%c0_27, %c0_28] : memref<4x1xf32, #tpu.memory_space<vmem>>, vector<4x1xf32>
      %39 = arith.mulf %38, %37 : vector<4x1xf32>
      %c0_29 = arith.constant 0 : index
      %c0_30 = arith.constant 0 : index
      %40 = vector.load %arg6[%c0_29, %c0_30] : memref<4x1xf32, #tpu.memory_space<vmem>>, vector<4x1xf32>
      tpu.vector_store %arg6[%c0_29, %c0_30], %39 {strides = array<i32>} : memref<4x1xf32, #tpu.memory_space<vmem>>, vector<4x1xf32>,
      %c0_31 = arith.constant 0 : index
      %c0_32 = arith.constant 0 : index
      %41 = vector.load %arg4[%c0_31, %c0_32] : memref<4x1xf32, #tpu.memory_space<vmem>>, vector<4x1xf32>
      %42 = arith.mulf %27, %39 : vector<4x1xf32>
      %43 = arith.subf %41, %42 : vector<4x1xf32>
      %c0_33 = arith.constant 0 : index
      %c0_34 = arith.constant 0 : index
      %44 = vector.load %arg7[%c0_33, %c0_34] : memref<4x1xf32, #tpu.memory_space<vmem>>, vector<4x1xf32>
      tpu.vector_store %arg7[%c0_33, %c0_34], %43 {strides = array<i32>} : memref<4x1xf32, #tpu.memory_space<vmem>>, vector<4x1xf32>,
    } else {
    }
    return
  }
  func.func @transform_0(%arg0: i32) -> (i32, i32, i32) {
    %c0_i32 = arith.constant 0 : i32
    %c0_i32_0 = arith.constant 0 : i32
    %c0_i32_1 = arith.constant 0 : i32
    return %arg0, %c0_i32, %c0_i32_0 : i32, i32, i32
  }
  func.func @transform_1(%arg0: i32) -> (i32, i32) {
    %c0_i32 = arith.constant 0 : i32
    %c0_i32_0 = arith.constant 0 : i32
    %c0_i32_1 = arith.constant 0 : i32
    return %c0_i32, %c0_i32_0 : i32, i32
  }
  func.func @transform_2(%arg0: i32) -> (i32, i32) {
    %c0_i32 = arith.constant 0 : i32
    %c0_i32_0 = arith.constant 0 : i32
    %c0_i32_1 = arith.constant 0 : i32
    return %c0_i32, %c0_i32_0 : i32, i32
  }
  func.func @transform_3(%arg0: i32) -> (i32, i32) {
    %c0_i32 = arith.constant 0 : i32
    %c0_i32_0 = arith.constant 0 : i32
    %c0_i32_1 = arith.constant 0 : i32
    return %c0_i32, %c0_i32_0 : i32, i32
  }
  func.func @transform_4(%arg0: i32) -> (i32, i32, i32) {
    %c0_i32 = arith.constant 0 : i32
    %c0_i32_0 = arith.constant 0 : i32
    %c0_i32_1 = arith.constant 0 : i32
    return %arg0, %c0_i32, %c0_i32_0 : i32, i32, i32
  }
  func.func @transform_5(%arg0: i32) -> (i32, i32) {
    %c0_i32 = arith.constant 0 : i32
    %c0_i32_0 = arith.constant 0 : i32
    %c0_i32_1 = arith.constant 0 : i32
    return %c0_i32, %c0_i32_0 : i32, i32
  }
  func.func @transform_6(%arg0: i32) -> (i32, i32) {
    %c0_i32 = arith.constant 0 : i32
    %c0_i32_0 = arith.constant 0 : i32
    %c0_i32_1 = arith.constant 0 : i32
    return %c0_i32, %c0_i32_0 : i32, i32
  }
}

module attributes {stable_mosaic.version = 11 : i64} {
  func.func @_conv3x3_stats_kernel(%arg0: i32, %arg1: memref<1x4x512xf32, #tpu.memory_space<vmem>>, %arg2: memref<4x1xf32, #tpu.memory_space<vmem>>, %arg3: memref<4x1xf32, #tpu.memory_space<vmem>>, %arg4: memref<1x512xf32, #tpu.memory_space<vmem>>, %arg5: memref<9x8x4xbf16, #tpu.memory_space<vmem>>, %arg6: memref<8x1xf32, #tpu.memory_space<vmem>>, %arg7: memref<8x1xf32, #tpu.memory_space<vmem>>, %arg8: memref<1x384xf32, #tpu.memory_space<vmem>>, %arg9: memref<1x8x384xf32, #tpu.memory_space<vmem>>, %arg10: memref<8x1xf32, #tpu.memory_space<vmem>>, %arg11: memref<8x1xf32, #tpu.memory_space<vmem>>, %arg12: memref<8x1xf32, #tpu.memory_space<vmem>>, %arg13: memref<8x1xf32, #tpu.memory_space<vmem>>) attributes {dimension_semantics = [#tpu.dimension_semantics<arbitrary>], iteration_bounds = array<i64: 2>, scalar_prefetch = 0 : i64, scratch_operands = 2 : i64, tpu.core_type = #tpu.core_type<tc>, window_params = [{transform_indices = @transform_0, window_bounds = array<i64: 1, 4, 512>}, {pipeline_mode = #tpu.pipeline_mode<synchronous>, transform_indices = @transform_1, window_bounds = array<i64: 4, 1>}, {pipeline_mode = #tpu.pipeline_mode<synchronous>, transform_indices = @transform_2, window_bounds = array<i64: 4, 1>}, {pipeline_mode = #tpu.pipeline_mode<synchronous>, transform_indices = @transform_3, window_bounds = array<i64: 1, 512>}, {pipeline_mode = #tpu.pipeline_mode<synchronous>, transform_indices = @transform_4, window_bounds = array<i64: 9, 8, 4>}, {pipeline_mode = #tpu.pipeline_mode<synchronous>, transform_indices = @transform_5, window_bounds = array<i64: 8, 1>}, {pipeline_mode = #tpu.pipeline_mode<synchronous>, transform_indices = @transform_6, window_bounds = array<i64: 8, 1>}, {pipeline_mode = #tpu.pipeline_mode<synchronous>, transform_indices = @transform_7, window_bounds = array<i64: 1, 384>}, {transform_indices = @transform_8, window_bounds = array<i64: 1, 8, 384>}, {pipeline_mode = #tpu.pipeline_mode<synchronous>, transform_indices = @transform_9, window_bounds = array<i64: 8, 1>}, {pipeline_mode = #tpu.pipeline_mode<synchronous>, transform_indices = @transform_10, window_bounds = array<i64: 8, 1>}]} {
    %c0_i32 = arith.constant 0 : i32
    %0 = arith.cmpi eq, %arg0, %c0_i32 : i32
    %1 = arith.extui %0 : i1 to i32
    %c0_i32_0 = arith.constant 0 : i32
    %2 = arith.cmpi ne, %1, %c0_i32_0 : i32
    scf.if %2 {
      %cst_55 = arith.constant 0.000000e+00 : f32
      %96 = vector.broadcast %cst_55 : f32 to vector<8x1xf32>
      %c0_56 = arith.constant 0 : index
      %c0_57 = arith.constant 0 : index
      %97 = vector.load %arg12[%c0_56, %c0_57] : memref<8x1xf32, #tpu.memory_space<vmem>>, vector<8x1xf32>
      tpu.vector_store %arg12[%c0_56, %c0_57], %96 {strides = array<i32>} : memref<8x1xf32, #tpu.memory_space<vmem>>, vector<8x1xf32>,
      %cst_58 = arith.constant 0.000000e+00 : f32
      %98 = vector.broadcast %cst_58 : f32 to vector<8x1xf32>
      %c0_59 = arith.constant 0 : index
      %c0_60 = arith.constant 0 : index
      %99 = vector.load %arg13[%c0_59, %c0_60] : memref<8x1xf32, #tpu.memory_space<vmem>>, vector<8x1xf32>
      tpu.vector_store %arg13[%c0_59, %c0_60], %98 {strides = array<i32>} : memref<8x1xf32, #tpu.memory_space<vmem>>, vector<8x1xf32>,
    } else {
    }
    %c0 = arith.constant 0 : index
    %c0_1 = arith.constant 0 : index
    %c0_2 = arith.constant 0 : index
    %3 = vector.load %arg1[%c0, %c0_1, %c0_2] : memref<1x4x512xf32, #tpu.memory_space<vmem>>, vector<1x4x512xf32>
    %4 = vector.shape_cast %3 : vector<1x4x512xf32> to vector<4x512xf32>
    %c0_3 = arith.constant 0 : index
    %c0_4 = arith.constant 0 : index
    %5 = vector.load %arg2[%c0_3, %c0_4] : memref<4x1xf32, #tpu.memory_space<vmem>>, vector<4x1xf32>
    %6 = vector.broadcast %5 : vector<4x1xf32> to vector<4x512xf32>
    %7 = arith.mulf %4, %6 : vector<4x512xf32>
    %c0_5 = arith.constant 0 : index
    %c0_6 = arith.constant 0 : index
    %8 = vector.load %arg3[%c0_5, %c0_6] : memref<4x1xf32, #tpu.memory_space<vmem>>, vector<4x1xf32>
    %9 = vector.broadcast %8 : vector<4x1xf32> to vector<4x512xf32>
    %10 = arith.addf %7, %9 : vector<4x512xf32>
    %cst = arith.constant 0.000000e+00 : f32
    %11 = vector.broadcast %cst : f32 to vector<4x512xf32>
    %12 = arith.cmpf ogt, %10, %11 : vector<4x512xf32>
    %cst_7 = arith.constant 1.000000e-01 : f32
    %13 = vector.broadcast %cst_7 : f32 to vector<4x512xf32>
    %14 = arith.mulf %13, %10 : vector<4x512xf32>
    %15 = arith.select %12, %10, %14 : vector<4x512xi1>, vector<4x512xf32>
    %c0_8 = arith.constant 0 : index
    %c0_9 = arith.constant 0 : index
    %16 = vector.load %arg4[%c0_8, %c0_9] : memref<1x512xf32, #tpu.memory_space<vmem>>, vector<1x512xf32>
    %17 = vector.broadcast %16 : vector<1x512xf32> to vector<4x512xf32>
    %18 = arith.mulf %15, %17 : vector<4x512xf32>
    %cst_10 = arith.constant 0.000000e+00 : f32
    %19 = vector.broadcast %cst_10 : f32 to vector<8x384xf32>
    %20 = vector.extract_strided_slice %18 {offsets = [0, 0], sizes = [4, 384], strides = [1, 1]} : vector<4x512xf32> to vector<4x384xf32>
    %21 = arith.truncf %20 : vector<4x384xf32> to vector<4x384xbf16>
    %c0_11 = arith.constant 0 : index
    %c0_12 = arith.constant 0 : index
    %c0_13 = arith.constant 0 : index
    %22 = vector.load %arg5[%c0_11, %c0_12, %c0_13] : memref<9x8x4xbf16, #tpu.memory_space<vmem>>, vector<1x8x4xbf16>
    %23 = vector.shape_cast %22 : vector<1x8x4xbf16> to vector<8x4xbf16>
    %cst_14 = arith.constant dense<0.000000e+00> : vector<8x384xf32>
    %24 = tpu.matmul %23, %21, %cst_14 {dimension_numbers = #tpu.dot_dimension_numbers<[1], [0], [0], [1], [0, 0, 1, 1], [], []>} : vector<8x4xbf16>, vector<4x384xbf16>, vector<8x384xf32> -> vector<8x384xf32>
    %25 = arith.addf %19, %24 : vector<8x384xf32>
    %26 = vector.extract_strided_slice %18 {offsets = [0, 1], sizes = [4, 384], strides = [1, 1]} : vector<4x512xf32> to vector<4x384xf32>
    %27 = arith.truncf %26 : vector<4x384xf32> to vector<4x384xbf16>
    %c1 = arith.constant 1 : index
    %c0_15 = arith.constant 0 : index
    %c0_16 = arith.constant 0 : index
    %28 = vector.load %arg5[%c1, %c0_15, %c0_16] : memref<9x8x4xbf16, #tpu.memory_space<vmem>>, vector<1x8x4xbf16>
    %29 = vector.shape_cast %28 : vector<1x8x4xbf16> to vector<8x4xbf16>
    %cst_17 = arith.constant dense<0.000000e+00> : vector<8x384xf32>
    %30 = tpu.matmul %29, %27, %cst_17 {dimension_numbers = #tpu.dot_dimension_numbers<[1], [0], [0], [1], [0, 0, 1, 1], [], []>} : vector<8x4xbf16>, vector<4x384xbf16>, vector<8x384xf32> -> vector<8x384xf32>
    %31 = arith.addf %25, %30 : vector<8x384xf32>
    %32 = vector.extract_strided_slice %18 {offsets = [0, 2], sizes = [4, 384], strides = [1, 1]} : vector<4x512xf32> to vector<4x384xf32>
    %33 = arith.truncf %32 : vector<4x384xf32> to vector<4x384xbf16>
    %c2 = arith.constant 2 : index
    %c0_18 = arith.constant 0 : index
    %c0_19 = arith.constant 0 : index
    %34 = vector.load %arg5[%c2, %c0_18, %c0_19] : memref<9x8x4xbf16, #tpu.memory_space<vmem>>, vector<1x8x4xbf16>
    %35 = vector.shape_cast %34 : vector<1x8x4xbf16> to vector<8x4xbf16>
    %cst_20 = arith.constant dense<0.000000e+00> : vector<8x384xf32>
    %36 = tpu.matmul %35, %33, %cst_20 {dimension_numbers = #tpu.dot_dimension_numbers<[1], [0], [0], [1], [0, 0, 1, 1], [], []>} : vector<8x4xbf16>, vector<4x384xbf16>, vector<8x384xf32> -> vector<8x384xf32>
    %37 = arith.addf %31, %36 : vector<8x384xf32>
    %38 = vector.extract_strided_slice %18 {offsets = [0, 18], sizes = [4, 384], strides = [1, 1]} : vector<4x512xf32> to vector<4x384xf32>
    %39 = arith.truncf %38 : vector<4x384xf32> to vector<4x384xbf16>
    %c3 = arith.constant 3 : index
    %c0_21 = arith.constant 0 : index
    %c0_22 = arith.constant 0 : index
    %40 = vector.load %arg5[%c3, %c0_21, %c0_22] : memref<9x8x4xbf16, #tpu.memory_space<vmem>>, vector<1x8x4xbf16>
    %41 = vector.shape_cast %40 : vector<1x8x4xbf16> to vector<8x4xbf16>
    %cst_23 = arith.constant dense<0.000000e+00> : vector<8x384xf32>
    %42 = tpu.matmul %41, %39, %cst_23 {dimension_numbers = #tpu.dot_dimension_numbers<[1], [0], [0], [1], [0, 0, 1, 1], [], []>} : vector<8x4xbf16>, vector<4x384xbf16>, vector<8x384xf32> -> vector<8x384xf32>
    %43 = arith.addf %37, %42 : vector<8x384xf32>
    %44 = vector.extract_strided_slice %18 {offsets = [0, 19], sizes = [4, 384], strides = [1, 1]} : vector<4x512xf32> to vector<4x384xf32>
    %45 = arith.truncf %44 : vector<4x384xf32> to vector<4x384xbf16>
    %c4 = arith.constant 4 : index
    %c0_24 = arith.constant 0 : index
    %c0_25 = arith.constant 0 : index
    %46 = vector.load %arg5[%c4, %c0_24, %c0_25] : memref<9x8x4xbf16, #tpu.memory_space<vmem>>, vector<1x8x4xbf16>
    %47 = vector.shape_cast %46 : vector<1x8x4xbf16> to vector<8x4xbf16>
    %cst_26 = arith.constant dense<0.000000e+00> : vector<8x384xf32>
    %48 = tpu.matmul %47, %45, %cst_26 {dimension_numbers = #tpu.dot_dimension_numbers<[1], [0], [0], [1], [0, 0, 1, 1], [], []>} : vector<8x4xbf16>, vector<4x384xbf16>, vector<8x384xf32> -> vector<8x384xf32>
    %49 = arith.addf %43, %48 : vector<8x384xf32>
    %50 = vector.extract_strided_slice %18 {offsets = [0, 20], sizes = [4, 384], strides = [1, 1]} : vector<4x512xf32> to vector<4x384xf32>
    %51 = arith.truncf %50 : vector<4x384xf32> to vector<4x384xbf16>
    %c5 = arith.constant 5 : index
    %c0_27 = arith.constant 0 : index
    %c0_28 = arith.constant 0 : index
    %52 = vector.load %arg5[%c5, %c0_27, %c0_28] : memref<9x8x4xbf16, #tpu.memory_space<vmem>>, vector<1x8x4xbf16>
    %53 = vector.shape_cast %52 : vector<1x8x4xbf16> to vector<8x4xbf16>
    %cst_29 = arith.constant dense<0.000000e+00> : vector<8x384xf32>
    %54 = tpu.matmul %53, %51, %cst_29 {dimension_numbers = #tpu.dot_dimension_numbers<[1], [0], [0], [1], [0, 0, 1, 1], [], []>} : vector<8x4xbf16>, vector<4x384xbf16>, vector<8x384xf32> -> vector<8x384xf32>
    %55 = arith.addf %49, %54 : vector<8x384xf32>
    %56 = vector.extract_strided_slice %18 {offsets = [0, 36], sizes = [4, 384], strides = [1, 1]} : vector<4x512xf32> to vector<4x384xf32>
    %57 = arith.truncf %56 : vector<4x384xf32> to vector<4x384xbf16>
    %c6 = arith.constant 6 : index
    %c0_30 = arith.constant 0 : index
    %c0_31 = arith.constant 0 : index
    %58 = vector.load %arg5[%c6, %c0_30, %c0_31] : memref<9x8x4xbf16, #tpu.memory_space<vmem>>, vector<1x8x4xbf16>
    %59 = vector.shape_cast %58 : vector<1x8x4xbf16> to vector<8x4xbf16>
    %cst_32 = arith.constant dense<0.000000e+00> : vector<8x384xf32>
    %60 = tpu.matmul %59, %57, %cst_32 {dimension_numbers = #tpu.dot_dimension_numbers<[1], [0], [0], [1], [0, 0, 1, 1], [], []>} : vector<8x4xbf16>, vector<4x384xbf16>, vector<8x384xf32> -> vector<8x384xf32>
    %61 = arith.addf %55, %60 : vector<8x384xf32>
    %62 = vector.extract_strided_slice %18 {offsets = [0, 37], sizes = [4, 384], strides = [1, 1]} : vector<4x512xf32> to vector<4x384xf32>
    %63 = arith.truncf %62 : vector<4x384xf32> to vector<4x384xbf16>
    %c7 = arith.constant 7 : index
    %c0_33 = arith.constant 0 : index
    %c0_34 = arith.constant 0 : index
    %64 = vector.load %arg5[%c7, %c0_33, %c0_34] : memref<9x8x4xbf16, #tpu.memory_space<vmem>>, vector<1x8x4xbf16>
    %65 = vector.shape_cast %64 : vector<1x8x4xbf16> to vector<8x4xbf16>
    %cst_35 = arith.constant dense<0.000000e+00> : vector<8x384xf32>
    %66 = tpu.matmul %65, %63, %cst_35 {dimension_numbers = #tpu.dot_dimension_numbers<[1], [0], [0], [1], [0, 0, 1, 1], [], []>} : vector<8x4xbf16>, vector<4x384xbf16>, vector<8x384xf32> -> vector<8x384xf32>
    %67 = arith.addf %61, %66 : vector<8x384xf32>
    %68 = vector.extract_strided_slice %18 {offsets = [0, 38], sizes = [4, 384], strides = [1, 1]} : vector<4x512xf32> to vector<4x384xf32>
    %69 = arith.truncf %68 : vector<4x384xf32> to vector<4x384xbf16>
    %c8 = arith.constant 8 : index
    %c0_36 = arith.constant 0 : index
    %c0_37 = arith.constant 0 : index
    %70 = vector.load %arg5[%c8, %c0_36, %c0_37] : memref<9x8x4xbf16, #tpu.memory_space<vmem>>, vector<1x8x4xbf16>
    %71 = vector.shape_cast %70 : vector<1x8x4xbf16> to vector<8x4xbf16>
    %cst_38 = arith.constant dense<0.000000e+00> : vector<8x384xf32>
    %72 = tpu.matmul %71, %69, %cst_38 {dimension_numbers = #tpu.dot_dimension_numbers<[1], [0], [0], [1], [0, 0, 1, 1], [], []>} : vector<8x4xbf16>, vector<4x384xbf16>, vector<8x384xf32> -> vector<8x384xf32>
    %73 = arith.addf %67, %72 : vector<8x384xf32>
    %c0_39 = arith.constant 0 : index
    %c0_40 = arith.constant 0 : index
    %c0_41 = arith.constant 0 : index
    %74 = vector.load %arg9[%c0_39, %c0_40, %c0_41] : memref<1x8x384xf32, #tpu.memory_space<vmem>>, vector<1x8x384xf32>
    %75 = vector.shape_cast %74 : vector<1x8x384xf32> to vector<8x384xf32>
    %76 = vector.shape_cast %73 : vector<8x384xf32> to vector<1x8x384xf32>
    tpu.vector_store %arg9[%c0_39, %c0_40, %c0_41], %76 {strides = array<i32>} : memref<1x8x384xf32, #tpu.memory_space<vmem>>, vector<1x8x384xf32>,
    %c0_42 = arith.constant 0 : index
    %c0_43 = arith.constant 0 : index
    %77 = vector.load %arg8[%c0_42, %c0_43] : memref<1x384xf32, #tpu.memory_space<vmem>>, vector<1x384xf32>
    %c0_44 = arith.constant 0 : index
    %c0_45 = arith.constant 0 : index
    %78 = vector.load %arg12[%c0_44, %c0_45] : memref<8x1xf32, #tpu.memory_space<vmem>>, vector<8x1xf32>
    %79 = vector.broadcast %77 : vector<1x384xf32> to vector<8x384xf32>
    %80 = arith.mulf %73, %79 : vector<8x384xf32>
    %cst_46 = arith.constant dense<0.000000e+00> : vector<8xf32>
    %81 = vector.multi_reduction <add>, %80, %cst_46 [1] : vector<8x384xf32> to vector<8xf32>
    %82 = vector.shape_cast %81 : vector<8xf32> to vector<8x1xf32>
    %83 = arith.addf %78, %82 : vector<8x1xf32>
    %c0_47 = arith.constant 0 : index
    %c0_48 = arith.constant 0 : index
    %84 = vector.load %arg12[%c0_47, %c0_48] : memref<8x1xf32, #tpu.memory_space<vmem>>, vector<8x1xf32>
    tpu.vector_store %arg12[%c0_47, %c0_48], %83 {strides = array<i32>} : memref<8x1xf32, #tpu.memory_space<vmem>>, vector<8x1xf32>,
    %c0_49 = arith.constant 0 : index
    %c0_50 = arith.constant 0 : index
    %85 = vector.load %arg13[%c0_49, %c0_50] : memref<8x1xf32, #tpu.memory_space<vmem>>, vector<8x1xf32>
    %86 = arith.mulf %73, %73 : vector<8x384xf32>
    %87 = vector.broadcast %77 : vector<1x384xf32> to vector<8x384xf32>
    %88 = arith.mulf %86, %87 : vector<8x384xf32>
    %cst_51 = arith.constant dense<0.000000e+00> : vector<8xf32>
    %89 = vector.multi_reduction <add>, %88, %cst_51 [1] : vector<8x384xf32> to vector<8xf32>
    %90 = vector.shape_cast %89 : vector<8xf32> to vector<8x1xf32>
    %91 = arith.addf %85, %90 : vector<8x1xf32>
    %c0_52 = arith.constant 0 : index
    %c0_53 = arith.constant 0 : index
    %92 = vector.load %arg13[%c0_52, %c0_53] : memref<8x1xf32, #tpu.memory_space<vmem>>, vector<8x1xf32>
    tpu.vector_store %arg13[%c0_52, %c0_53], %91 {strides = array<i32>} : memref<8x1xf32, #tpu.memory_space<vmem>>, vector<8x1xf32>,
    %c1_i32 = arith.constant 1 : i32
    %93 = arith.cmpi eq, %arg0, %c1_i32 : i32
    %94 = arith.extui %93 : i1 to i32
    %c0_i32_54 = arith.constant 0 : i32
    %95 = arith.cmpi ne, %94, %c0_i32_54 : i32
    scf.if %95 {
      %c0_55 = arith.constant 0 : index
      %c0_56 = arith.constant 0 : index
      %96 = vector.load %arg12[%c0_55, %c0_56] : memref<8x1xf32, #tpu.memory_space<vmem>>, vector<8x1xf32>
      %cst_57 = arith.constant 0.001953125 : f32
      %97 = vector.broadcast %cst_57 : f32 to vector<8x1xf32>
      %98 = arith.mulf %96, %97 : vector<8x1xf32>
      %c0_58 = arith.constant 0 : index
      %c0_59 = arith.constant 0 : index
      %99 = vector.load %arg13[%c0_58, %c0_59] : memref<8x1xf32, #tpu.memory_space<vmem>>, vector<8x1xf32>
      %cst_60 = arith.constant 0.001953125 : f32
      %100 = vector.broadcast %cst_60 : f32 to vector<8x1xf32>
      %101 = arith.mulf %99, %100 : vector<8x1xf32>
      %102 = arith.mulf %98, %98 : vector<8x1xf32>
      %103 = arith.subf %101, %102 : vector<8x1xf32>
      %cst_61 = arith.constant 0.000000e+00 : f32
      %104 = vector.broadcast %cst_61 : f32 to vector<8x1xf32>
      %105 = arith.maximumf %103, %104 : vector<8x1xf32>
      %cst_62 = arith.constant 9.99999974E-6 : f32
      %106 = vector.broadcast %cst_62 : f32 to vector<8x1xf32>
      %107 = arith.addf %105, %106 : vector<8x1xf32>
      %108 = math.rsqrt %107 : vector<8x1xf32>
      %c0_63 = arith.constant 0 : index
      %c0_64 = arith.constant 0 : index
      %109 = vector.load %arg6[%c0_63, %c0_64] : memref<8x1xf32, #tpu.memory_space<vmem>>, vector<8x1xf32>
      %110 = arith.mulf %109, %108 : vector<8x1xf32>
      %c0_65 = arith.constant 0 : index
      %c0_66 = arith.constant 0 : index
      %111 = vector.load %arg10[%c0_65, %c0_66] : memref<8x1xf32, #tpu.memory_space<vmem>>, vector<8x1xf32>
      tpu.vector_store %arg10[%c0_65, %c0_66], %110 {strides = array<i32>} : memref<8x1xf32, #tpu.memory_space<vmem>>, vector<8x1xf32>,
      %c0_67 = arith.constant 0 : index
      %c0_68 = arith.constant 0 : index
      %112 = vector.load %arg7[%c0_67, %c0_68] : memref<8x1xf32, #tpu.memory_space<vmem>>, vector<8x1xf32>
      %113 = arith.mulf %98, %110 : vector<8x1xf32>
      %114 = arith.subf %112, %113 : vector<8x1xf32>
      %c0_69 = arith.constant 0 : index
      %c0_70 = arith.constant 0 : index
      %115 = vector.load %arg11[%c0_69, %c0_70] : memref<8x1xf32, #tpu.memory_space<vmem>>, vector<8x1xf32>
      tpu.vector_store %arg11[%c0_69, %c0_70], %114 {strides = array<i32>} : memref<8x1xf32, #tpu.memory_space<vmem>>, vector<8x1xf32>,
    } else {
    }
    return
  }
  func.func @transform_0(%arg0: i32) -> (i32, i32, i32) {
    %c0_i32 = arith.constant 0 : i32
    %c0_i32_0 = arith.constant 0 : i32
    %c0_i32_1 = arith.constant 0 : i32
    return %arg0, %c0_i32, %c0_i32_0 : i32, i32, i32
  }
  func.func @transform_1(%arg0: i32) -> (i32, i32) {
    %c0_i32 = arith.constant 0 : i32
    %c0_i32_0 = arith.constant 0 : i32
    %c0_i32_1 = arith.constant 0 : i32
    return %c0_i32, %c0_i32_0 : i32, i32
  }
  func.func @transform_2(%arg0: i32) -> (i32, i32) {
    %c0_i32 = arith.constant 0 : i32
    %c0_i32_0 = arith.constant 0 : i32
    %c0_i32_1 = arith.constant 0 : i32
    return %c0_i32, %c0_i32_0 : i32, i32
  }
  func.func @transform_3(%arg0: i32) -> (i32, i32) {
    %c0_i32 = arith.constant 0 : i32
    %c0_i32_0 = arith.constant 0 : i32
    %c0_i32_1 = arith.constant 0 : i32
    return %c0_i32, %c0_i32_0 : i32, i32
  }
  func.func @transform_4(%arg0: i32) -> (i32, i32, i32) {
    %c0_i32 = arith.constant 0 : i32
    %c0_i32_0 = arith.constant 0 : i32
    %c0_i32_1 = arith.constant 0 : i32
    %c0_i32_2 = arith.constant 0 : i32
    return %c0_i32, %c0_i32_0, %c0_i32_1 : i32, i32, i32
  }
  func.func @transform_5(%arg0: i32) -> (i32, i32) {
    %c0_i32 = arith.constant 0 : i32
    %c0_i32_0 = arith.constant 0 : i32
    %c0_i32_1 = arith.constant 0 : i32
    return %c0_i32, %c0_i32_0 : i32, i32
  }
  func.func @transform_6(%arg0: i32) -> (i32, i32) {
    %c0_i32 = arith.constant 0 : i32
    %c0_i32_0 = arith.constant 0 : i32
    %c0_i32_1 = arith.constant 0 : i32
    return %c0_i32, %c0_i32_0 : i32, i32
  }
  func.func @transform_7(%arg0: i32) -> (i32, i32) {
    %c0_i32 = arith.constant 0 : i32
    %c0_i32_0 = arith.constant 0 : i32
    %c0_i32_1 = arith.constant 0 : i32
    return %c0_i32, %c0_i32_0 : i32, i32
  }
  func.func @transform_8(%arg0: i32) -> (i32, i32, i32) {
    %c0_i32 = arith.constant 0 : i32
    %c0_i32_0 = arith.constant 0 : i32
    %c0_i32_1 = arith.constant 0 : i32
    return %arg0, %c0_i32, %c0_i32_0 : i32, i32, i32
  }
  func.func @transform_9(%arg0: i32) -> (i32, i32) {
    %c0_i32 = arith.constant 0 : i32
    %c0_i32_0 = arith.constant 0 : i32
    %c0_i32_1 = arith.constant 0 : i32
    return %c0_i32, %c0_i32_0 : i32, i32
  }
  func.func @transform_10(%arg0: i32) -> (i32, i32) {
    %c0_i32 = arith.constant 0 : i32
    %c0_i32_0 = arith.constant 0 : i32
    %c0_i32_1 = arith.constant 0 : i32
    return %c0_i32, %c0_i32_0 : i32, i32
  }
}

</mosaic_0001>

<bundles_post_ra>
// kernel: residual_layer_forward.3
= control target key start
LH: loop header
LB: loop body
LE: loop exit
PB: predicated region body
PF: predicated region fallthrough
CT: control target
= control target key end

     0   :  { %s565_s21 = smov 0   ;;  %s623_s0 = inlined_call_operand.vmem [shape: f32[2,8,512], index: 0, kind: input, shape index: {}]   ;;  %s624_s1 = inlined_call_operand.vmem [shape: bf16[4,8], index: 1, kind: input, shape index: {}]   ;;  %s625_s2 = inlined_call_operand.vmem [shape: f32[4,1], index: 2, kind: input, shape index: {}]   ;;  %s626_s3 = inlined_call_operand.vmem [shape: f32[4,1], index: 3, kind: input, shape index: {}]   ;;  %s627_s4 = inlined_call_operand.vmem [shape: f32[2,4,512], index: 4, kind: output, shape index: {0}]   ;;  %s628_s5 = inlined_call_operand.vmem [shape: f32[4,1], index: 5, kind: output, shape index: {1}]   ;;  %s629_s6 = inlined_call_operand.vmem [shape: f32[4,1], index: 6, kind: output, shape index: {2}]  }
   0x1 LB: > { %s571_s22 = sadd.s32 4294967295, %s526_s21   ;;  %p493_p0 = scmp.ge.s32.totalorder %s526_s21, 1  ;;  %s526_s21 = sphi %s565_s21, %s17_s21  }
   0x2   : > { %p207_p1 = scmp.lt.s32.totalorder %s526_s21, 3 }
   0x4   : > { %p208_p2 = pnand %p493_p0, %p207_p1 }
   0x5   : > { %p237_p3 = scmp.lt.s32.totalorder (!%p208_p2), %s571_s22, 1  ;;  %p498_p4 = scmp.ne.s32.totalorder (!%p208_p2), %s571_s22, 0 }
   0x6   : > { %211 = sbr.rel (%p208_p2) target bundleno = 430 (0x1ae), region = 36 }
   0xd   : > { %s238_s23 = scalar_select %p237_p3, %s571_s22, 1 }
   0xe   : > { %251 = sbr.rel (%p498_p4) target bundleno = 21 (0x15), region = 40  ;;  %vm252_vm0 = vcmask (!%p498_p4), 3072   ;;  %v528_v0 = vmov (!%p498_p4), 0.0  }
   0xf   : > { %s506_s24 = sshll.u32 %s238_s23, 5  ;;  %s507_s25 = sshll.u32 %s238_s23, 4  ;;  %253 = vst.msk [vmem:[#allocation2] sm:$0xf] (!%p498_p4), %vm252_vm0, %v528_v0  ;;  %254 = vst.msk [vmem:[#allocation3] sm:$0xf] (!%p498_p4), %vm252_vm0, %v528_v0 }
  0x10   : > { %s241_s28 = scalar_lea.vmem %s623_s0, %s506_s24  ;;  %s583_s7 = scalar_lea.vmem %s627_s4, %s507_s25 }
  0x15 PF: > { %v256_v1 = vld [vmem:[%s241_s28 + $0x8] sm:$0xff]  ;;  %vm268_vm1 = vcmask 1043456   ;;  %v258_v2 = vld [vmem:[%s241_s28 + $0x18] sm:$0xff]  ;;  %v255_v3 = vld [vmem:[%s241_s28] sm:$0xff]  ;;  %v529_v8 = vmov 0   ;;  %vm264_vm2 = vcmask 64512  }
  0x16   : > { %v260_v4 = vpack.c.bf16 %v256_v1, %v256_v1  ;;  %v262_v5 = vpack.c.bf16 %v258_v2, %v258_v2  ;;  %v259_v6 = vpack.c.bf16 %v255_v3, %v255_v3  ;;  %v257_v7 = vld [vmem:[%s241_s28 + $0x10] sm:$0xff]  ;;  %313 = vmatprep.mubr.bf16.mxu0 %v529_v8  ;;  %354 = vmatprep.mubr.bf16.mxu1 %v529_v8  ;;  %v263_v12 = vld [vmem:[%s624_s1] sm:$0x3]  ;;  %vm384_vm3 = vcmask 3072   ;;  %v386_v44 = vld [vmem:[#allocation3] sm:$0xf] }
  0x17   : > { %v261_v9 = vpack.c.bf16 %v257_v7, %v257_v7  ;;  %v373_v41 = vld [vmem:[#allocation2] sm:$0xf]  ;;  %p503_p5 = scmp.ne.s32.totalorder %s571_s22, 1 }
  0x18   : > { %499 = vmatprep.subr.msk.bf16.mxu0 %vm268_vm1, %v260_v4  ;;  %501 = vmatprep.subr.msk.bf16.mxu1 %vm268_vm1, %v262_v5  ;;  %v270_v10 = vsel %vm268_vm1, %v259_v6, 0  ;;  %v415_v55 = vld [vmem:[%s625_s2] sm:$0xf] (!%p503_p5) }
  0x19   : > { %282 = vmatpush1.bf16.msra.mxu0 %v270_v10  ;;  %v276_v11 = vsel %vm268_vm1, %v261_v9, 0  ;;  %v418_v58 = vld [vmem:[%s626_s3] sm:$0xf] (!%p503_p5) }
  0x1a   : > { %323 = vmatpush1.bf16.msra.mxu1 %v276_v11 }
  0x1c   : > { %500 = vmatmul.mubr.msk.bf16.vlgmr.msra.gmra.mrb[0].mxu0 %vm264_vm2, %v263_v12 }
  0x1d   : > { %502 = vmatmul.mubr.msk.bf16.vlgmr.msra.gmra.mrb[0].mxu1 %vm264_vm2, %v263_v12 }
  0xef   : > { %v315_v13 = vpop.f32.mrb[0].mxu0 }
  0xf0   : > { %v374_v14 = vsel %vm268_vm1, %v315_v13, 0.0  ;;  %v387_v15 = vmul.f32 %v315_v13, %v315_v13  ;;  %v356_v16 = vpop.f32.mrb[0].mxu1  ;;  %v317_v17 = vpop.f32.mrb[1].mxu0 }
  0xf1   : > { %v389_v18 = vmul.f32 %v356_v16, %v356_v16  ;;  %v367_v19 = vcombine.low %v315_v13, %v317_v17  ;;  %v375_v20 = vsel %vm268_vm1, %v317_v17, 0.0  ;;  %v388_v21 = vmul.f32 %v317_v17, %v317_v17  ;;  %v358_v22 = vpop.f32.mrb[1].mxu1  ;;  %v319_v23 = vpop.f32.mrb[2].mxu0 }
  0xf2   : > { %v391_v24 = vsel %vm268_vm1, %v387_v15, 0.0  ;;  %v368_v25 = vcombine.low %v356_v16, %v358_v22  ;;  %v360_v26 = vpop.f32.mrb[2].mxu1  ;;  %v320_v27 = vpop.f32.mrb[3].mxu0  ;;  %v376_v28 = vadd.f32 %v375_v20, %v374_v14  ;;  %v390_v30 = vmul.f32 %v358_v22, %v358_v22 }
  0xf3   : > { %371 = vst [vmem:[%s583_s7] sm:$0xff] %v367_v19  ;;  %v392_v29 = vsel %vm268_vm1, %v388_v21, 0.0  ;;  %v361_v31 = vpop.f32.mrb[3].mxu1  ;;  %v377_v32 = vsel %vm268_vm1, %v356_v16, 0.0  ;;  %v394_v33 = vsel %vm268_vm1, %v389_v18, 0.0  ;;  %v379_v36 = vsel %vm268_vm1, %v358_v22, 0.0 }
  0xf4   : > { %372 = vst [vmem:[%s583_s7 + $0x8] sm:$0xff] %v368_v25  ;;  %v378_v34 = vadd.f32 %v377_v32, %v376_v28  ;;  %v393_v35 = vadd.f32 %v392_v29, %v391_v24  ;;  %v396_v39 = vsel %vm268_vm1, %v390_v30, 0.0 }
  0xf6   : > { %v380_v37 = vadd.f32 %v379_v36, %v378_v34  ;;  %v395_v38 = vadd.f32 %v394_v33, %v393_v35 }
  0xf8   : > { %381 = vadd.xlane.f32.xlu0 %v380_v37  ;;  %v397_v40 = vadd.f32 %v396_v39, %v395_v38 }
  0xfc   : > { %398 = vadd.xlane.f32.xlu0 %v397_v40 }
 0x185   : > { %v382_v42 = vpop.xlane.xlu0 %381 }
 0x186   : > { %v383_v43 = vadd.f32 %v382_v42, %v373_v41  ;;  %405 = sbr.rel (%p503_p5) target bundleno = 430 (0x1ae), region = 44 }
 0x188   : > { %385 = vst.msk [vmem:[#allocation2] sm:$0xf] %vm384_vm3, %v383_v43 }
 0x189   : > { %v399_v45 = vpop.xlane.xlu0 %398 }
 0x18a   : > { %v400_v46 = vadd.f32 %v399_v45, %v386_v44 }
 0x18c   : > { %401 = vst.msk [vmem:[#allocation3] sm:$0xf] %vm384_vm3, %v400_v46 }
 0x18f   : > { %v406_v47 = vld [vmem:[#allocation2] sm:$0xf] }
 0x190   : > { %v407_v49 = vmul.f32 0.001953125, %v406_v47 }
 0x192   : > { %v410_v51 = vmul.f32 %v407_v49, %v407_v49 }
 0x193   : > { %v408_v48 = vld [vmem:[#allocation3] sm:$0xf] }
 0x194   : > { %v409_v50 = vmul.f32 0.001953125, %v408_v48 }
 0x196   : > { %v411_v52 = vsub.f32 %v409_v50, %v410_v51 }
 0x198   : > { %v412_v53 = vmax.f32 %v411_v52, 0.0 }
 0x19a   : > { %v413_v54 = vadd.f32 1e-05, %v412_v53 }
 0x19c   : > { %518 = vrsqrt.f32 %v413_v54 }
 0x1a6   : > { %v519_v56 = vpop.eup %518 }
 0x1a7   : > { %v416_v57 = vmul.f32 %v519_v56, %v415_v55 }
 0x1a9   : > { %417 = vst.msk [vmem:[%s628_s5] sm:$0xf] %vm384_vm3, %v416_v57  ;;  %v419_v59 = vmul.f32 %v416_v57, %v407_v49 }
 0x1ab   : > { %v420_v60 = vsub.f32 %v418_v58, %v419_v59 }
 0x1ad   : > { %421 = vst.msk [vmem:[%s629_s6] sm:$0xf] %vm384_vm3, %v420_v60 }
 0x1ae PF: > { %s17_s21 = sadd.s32 1, %s526_s21  }
 0x1af   : > { %p14_p6 = scmp.ge.s32.totalorder %s17_s21, 4  }
 0x1b1   :  { %16 = sbr.rel (!%p14_p6) target bundleno = 1 (0x1), region = 90 }

// kernel: residual_layer_forward.5
= control target key start
LH: loop header
LB: loop body
LE: loop exit
PB: predicated region body
PF: predicated region fallthrough
CT: control target
= control target key end

     0   :  { %s403_s15 = smov 0   ;;  %s436_s0 = inlined_call_operand.vmem [shape: f32[2,8,384], index: 0, kind: input, shape index: {}]   ;;  %s437_s1 = inlined_call_operand.vmem [shape: f32[8,1], index: 1, kind: input, shape index: {}]   ;;  %s438_s2 = inlined_call_operand.vmem [shape: f32[8,1], index: 2, kind: input, shape index: {}]   ;;  %s439_s3 = inlined_call_operand.vmem [shape: f32[2,8,512], index: 3, kind: input, shape index: {}]   ;;  %s440_s4 = inlined_call_operand.vmem [shape: f32[2,8,384], index: 4, kind: output, shape index: {}]  }
   0x1 LB: > { %s344_s16 = sadd.s32 4294967295, %s374_s15   ;;  %p348_p0 = scmp.ge.s32.totalorder %s374_s15, 1  ;;  %s374_s15 = sphi %s403_s15, %s14_s15  }
   0x2   : > { %p172_p1 = scmp.lt.s32.totalorder %s374_s15, 3 }
   0x4   : > { %p173_p2 = pnand %p348_p0, %p172_p1 }
   0x5   : > { %v221_v0 = vld [vmem:[%s437_s1] sm:$0xff] (!%p173_p2)  ;;  %p203_p3 = scmp.lt.s32.totalorder (!%p173_p2), %s344_s16, 1  ;;  %v376_v1 = vmov (!%p173_p2), 0   ;;  %s377_s25 = smov (!%p173_p2), 109   ;;  %vm264_vm0 = vcmask (!%p173_p2), 891904  }
   0x6   : > { %176 = sbr.rel (%p173_p2) target bundleno = 148 (0x94), region = 36  ;;  %367 = vset.pattern.permute.xlu0 (!%p173_p2), %v376_v1  ;;  %v230_v2 = vld [vmem:[%s438_s2] sm:$0xff] (!%p173_p2) }
   0x7   : > { %224 = vperm.xlu0 (!%p173_p2), %367, %v221_v0  }
   0xb   : > { %233 = vperm.xlu0 (!%p173_p2), %367, %v230_v2  }
   0xd   : > { %s442_s16 = smov (!%p203_p3, %s344_s16), 1 }
   0xe   : > { %s355_s21 = sshll.u32 %s442_s16, 5  ;;  %s356_s26 = smul.u32 24, %s442_s16 }
   0xf   : > { %s212_s24 = scalar_lea.vmem %s439_s3, %s355_s21 }
  0x10   : > { %v248_v3 = vld [vmem:[%s212_s24] sm:$0xff]  ;;  %v250_v4 = vld [vmem:[%s212_s24 + $0x10] sm:$0xff]  ;;  %v249_v5 = vld [vmem:[%s212_s24 + $0x8] sm:$0xff]  ;;  %s207_s29 = scalar_lea.vmem %s436_s0, %s356_s26  ;;  %s217_s6 = scalar_lea.vmem %s440_s4, %s356_s26 }
  0x11   : > { %256 = vrot.lane.b32.xlu1 %v248_v3, %s377_s25  ;;  %260 = vrot.lane.b32.xlu0 %v250_v4, %s377_s25  ;;  %v251_v6 = vld [vmem:[%s212_s24 + $0x18] sm:$0xff]  ;;  %v218_v9 = vld [vmem:[%s207_s29] sm:$0xff] }
  0x12   : > { %v219_v10 = vld [vmem:[%s207_s29 + $0x8] sm:$0xff]  ;;  %v220_v11 = vld [vmem:[%s207_s29 + $0x10] sm:$0xff] }
  0x15   : > { %258 = vrot.lane.b32.xlu1 %v249_v5, %s377_s25 }
  0x19   : > { %262 = vrot.lane.b32.xlu1 %v251_v6, %s377_s25 }
  0x83   : > { %v257_v7 = vpop.permute.xlu1 %256 }
  0x86   : > { %v225_v8 = vpop.permute.xlu0 %224 }
  0x87   : > { %v259_v12 = vpop.permute.xlu1 %258  ;;  %v227_v13 = vmul.f32 %v225_v8, %v218_v9  ;;  %v228_v14 = vmul.f32 %v225_v8, %v219_v10  ;;  %v229_v15 = vmul.f32 %v225_v8, %v220_v11 }
  0x88   : > { %v265_v23 = vsel %vm264_vm0, %v257_v7, %v259_v12 }
  0x8a   : > { %v234_v16 = vpop.permute.xlu0 %233 }
  0x8b   : > { %v236_v17 = vadd.f32 %v234_v16, %v227_v13  ;;  %v237_v18 = vadd.f32 %v234_v16, %v228_v14  ;;  %v238_v19 = vadd.f32 %v234_v16, %v229_v15  ;;  %v263_v20 = vpop.permute.xlu1 %262 }
  0x8d   : > { %vm239_vm1 = vcmp.gt.f32.partialorder %v236_v17, 0.0  ;;  %v242_v21 = vmul.f32 0.1, %v236_v17  ;;  %v243_v22 = vmul.f32 0.1, %v237_v18  ;;  %vm240_vm2 = vcmp.gt.f32.partialorder %v237_v18, 0.0 }
  0x8e   : > { %v244_v24 = vmul.f32 0.1, %v238_v19  ;;  %v261_v25 = vpop.permute.xlu0 %260  ;;  %vm241_vm3 = vcmp.gt.f32.partialorder %v238_v19, 0.0 }
  0x8f   : > { %v245_v26 = vsel %vm239_vm1, %v236_v17, %v242_v21  ;;  %v246_v27 = vsel %vm240_vm2, %v237_v18, %v243_v22  ;;  %v266_v28 = vsel %vm264_vm0, %v259_v12, %v261_v25  ;;  %v267_v29 = vsel %vm264_vm0, %v261_v25, %v263_v20 }
  0x90   : > { %v271_v30 = vadd.f32 %v265_v23, %v245_v26  ;;  %v272_v31 = vadd.f32 %v266_v28, %v246_v27  ;;  %v247_v32 = vsel %vm241_vm3, %v238_v19, %v244_v24 }
  0x91   : > { %v273_v33 = vadd.f32 %v267_v29, %v247_v32 }
  0x92   : > { %274 = vst [vmem:[%s217_s6] sm:$0xff] %v271_v30  ;;  %275 = vst [vmem:[%s217_s6 + $0x8] sm:$0xff] %v272_v31 }
  0x93   : > { %276 = vst [vmem:[%s217_s6 + $0x10] sm:$0xff] %v273_v33 }
  0x94 PF: > { %s14_s15 = sadd.s32 1, %s374_s15  }
  0x95   : > { %p11_p4 = scmp.ge.s32.totalorder %s14_s15, 4  }
  0x97   :  { %13 = sbr.rel (!%p11_p4) target bundleno = 1 (0x1), region = 69 }

// kernel: residual_layer_forward.4
= control target key start
LH: loop header
LB: loop body
LE: loop exit
PB: predicated region body
PF: predicated region fallthrough
CT: control target
= control target key end

     0   :  { %s1828_s13 = smov 0   ;;  %s2055_s0 = inlined_call_operand.vmem [shape: f32[2,4,512], index: 0, kind: input, shape index: {}]   ;;  %s2056_s1 = inlined_call_operand.vmem [shape: f32[4,1], index: 1, kind: input, shape index: {}]   ;;  %s2057_s2 = inlined_call_operand.vmem [shape: f32[4,1], index: 2, kind: input, shape index: {}]   ;;  %s2058_s3 = inlined_call_operand.vmem [shape: f32[1,512], index: 3, kind: input, shape index: {}]   ;;  %s2059_s4 = inlined_call_operand.vmem [shape: bf16[9,8,4], index: 4, kind: input, shape index: {}]   ;;  %s2060_s5 = inlined_call_operand.vmem [shape: f32[8,1], index: 5, kind: input, shape index: {}]   ;;  %s2061_s6 = inlined_call_operand.vmem [shape: f32[8,1], index: 6, kind: input, shape index: {}]   ;;  %s2062_s7 = inlined_call_operand.vmem [shape: f32[1,384], index: 7, kind: input, shape index: {}]   ;;  %s2063_s8 = inlined_call_operand.vmem [shape: f32[2,8,384], index: 8, kind: output, shape index: {0}]   ;;  %s2064_s9 = inlined_call_operand.vmem [shape: f32[8,1], index: 9, kind: output, shape index: {1}]   ;;  %s2065_s10 = inlined_call_operand.vmem [shape: f32[8,1], index: 10, kind: output, shape index: {2}]  }
   0x1 LB: > { %s1834_s14 = sadd.s32 4294967295, %s1758_s13   ;;  %p1547_p0 = scmp.ge.s32.totalorder %s1758_s13, 1  ;;  %s1758_s13 = sphi %s1828_s13, %s21_s13  }
   0x2   : > { %p307_p1 = scmp.lt.s32.totalorder %s1758_s13, 3 }
   0x4   : > { %p308_p2 = pnand %p1547_p0, %p307_p1 }
   0x5   : > { %p345_p3 = scmp.lt.s32.totalorder (!%p308_p2), %s1834_s14, 1  ;;  %p1551_p4 = scmp.ne.s32.totalorder (!%p308_p2), %s1834_s14, 0 }
   0x6   : > { %311 = sbr.rel (%p308_p2) target bundleno = 786 (0x312), region = 52 }
   0xd   : > { %s346_s15 = scalar_select %p345_p3, %s1834_s14, 1 }
   0xe   : > { %359 = sbr.rel (%p1551_p4) target bundleno = 21 (0x15), region = 56  ;;  %vm360_vm0 = vcmask (!%p1551_p4), 7168   ;;  %v1760_v0 = vmov (!%p1551_p4), 0.0  }
   0xf   : > { %s1590_s16 = sshll.u32 %s346_s15, 4  ;;  %s1727_s17 = smul.u32 24, %s346_s15  ;;  %361 = vst.msk [vmem:[#allocation2] sm:$0xff] (!%p1551_p4), %vm360_vm0, %v1760_v0  ;;  %362 = vst.msk [vmem:[#allocation3] sm:$0xff] (!%p1551_p4), %vm360_vm0, %v1760_v0 }
  0x10   : > { %s349_s20 = scalar_lea.vmem %s2055_s0, %s1590_s16 }
  0x11   : > { %s1846_s23 = scalar_lea.vmem %s2063_s8, %s1727_s17 }
  0x15 PF: > { %v365_v1 = vld [vmem:[%s2056_s1] sm:$0xf]  ;;  %v1761_v2 = vmov 0   ;;  %v1762_v4 = vmov 839922192   ;;  %v373_v6 = vlaneseq  ;;  %v364_v18 = vld [vmem:[%s349_s20 + $0x8] sm:$0xff] }
  0x16   : > { %1749 = vset.pattern.permute.xlu0 %v1761_v2  ;;  %500 = vmatprep.mubr.bf16.mxu0 %v1761_v2  ;;  %v380_v3 = vld [vmem:[%s2057_s2] sm:$0xf]  ;;  %v371_v5 = vunpack.c.l.s4 %v1762_v4  ;;  %v1763_v37 = vmov 0.0   ;;  %s1764_s30 = smov 127   ;;  %vm1765_vm3 = vmmov 0   ;;  %s1766_s11 = smov 126  }
  0x17   : > { %368 = vperm.xlu0 %1749, %v365_v1   ;;  %v1857_v8 = vshrl.u32 %v373_v6, 7  ;;  %v401_v16 = vld [vmem:[%s2058_s3] sm:$0xf]  ;;  %1609 = vmatprep.subr.bf16.mxu1 %v1763_v37  ;;  %s1767_s12 = smov 110   ;;  %s1768_s15 = smov 109   ;;  %vm450_vm4 = vcmask 1039360  }
  0x18   : > { %v372_v7 = vunpack.c.0.s8 %v371_v5  ;;  %v363_v17 = vld [vmem:[%s349_s20] sm:$0xff]  ;;  %1611 = vmatprep.mubr.msk.bf16.mxu1 %vm1765_vm3, %v1763_v37  ;;  %s1769_s16 = smov 108   ;;  %s1770_s17 = smov 92   ;;  %vm458_vm5 = vcmask 1041408   ;;  %vm454_vm6 = vcmask 31744   ;;  %vm652_vm7 = vcmask 1031168  }
  0x19   : > { %v405_v11 = vsub.s32 0, %v1857_v8  ;;  %v409_v12 = vsub.s32 1, %v1857_v8  ;;  %v413_v13 = vsub.s32 2, %v1857_v8  ;;  %v417_v14 = vsub.s32 3, %v1857_v8  ;;  %s1771_s18 = smov 91   ;;  %s1772_s19 = smov 90  }
  0x1a   : > { %v375_v9 = vsub.s32 %v372_v7, %v1857_v8  ;;  %v1552_v51 = vld [vmem:[%s2059_s4 + $0x4] sm:$0xf]  ;;  %vm762_vm8 = vcmask 900096   ;;  %v432_v63 = vld [vmem:[%s2059_s4] sm:$0xf]  ;;  %vm872_vm9 = vcmask 891904  }
  0x1b   : > { %383 = vperm.xlu0 %1749, %v380_v3   ;;  %v406_v19 = vrot.slane %v401_v16, %v405_v11  ;;  %v410_v20 = vrot.slane %v401_v16, %v409_v12  ;;  %v414_v21 = vrot.slane %v401_v16, %v413_v13  ;;  %v418_v22 = vrot.slane %v401_v16, %v417_v14  ;;  %v1559_v14 = vld [vmem:[%s2059_s4 + $0x8] sm:$0xf]  ;;  %p1587_p5 = scmp.ne.s32.totalorder %s1834_s14, 1 }
  0x1c   : > { %vm982_vm10 = vcmask 883712   ;;  %vm1092_vm11 = vcmask 752640   ;;  %vm1202_vm12 = vcmask 744448   ;;  %vm1312_vm13 = vcmask 736256  }
  0x1d   : > { %v419_v29 = vcombine.low %v406_v19, %v410_v20  ;;  %v420_v30 = vcombine.low %v414_v21, %v418_v22  ;;  %vm1441_vm14 = vcmask 7168  }
  0x96   : > { %v369_v10 = vpop.permute.xlu0 %368 }
  0x97   : > { %v376_v15 = vrot.slane %v369_v10, %v375_v9 }
  0x99   : > { %v378_v24 = vmul.f32 %v376_v15, %v363_v17  ;;  %v379_v25 = vmul.f32 %v376_v15, %v364_v18 }
  0x9a   : > { %v384_v23 = vpop.permute.xlu0 %383 }
  0x9b   : > { %v391_v26 = vrot.slane %v384_v23, %v375_v9 }
  0x9d   : > { %v393_v27 = vadd.f32 %v391_v26, %v378_v24  ;;  %v394_v28 = vadd.f32 %v391_v26, %v379_v25  ;;  %v1563_v24 = vld [vmem:[%s2059_s4 + $0xc] sm:$0xf] }
  0x9f   : > { %vm395_vm1 = vcmp.gt.f32.partialorder %v393_v27, 0.0  ;;  %vm396_vm2 = vcmp.gt.f32.partialorder %v394_v28, 0.0  ;;  %v397_v31 = vmul.f32 0.1, %v393_v27  ;;  %v398_v32 = vmul.f32 0.1, %v394_v28 }
  0xa1   : > { %v399_v33 = vsel %vm395_vm1, %v393_v27, %v397_v31  ;;  %v400_v34 = vsel %vm396_vm2, %v394_v28, %v398_v32 }
  0xa2   : > { %v423_v35 = vmul.f32 %v419_v29, %v399_v33  ;;  %v424_v36 = vmul.f32 %v420_v30, %v400_v34  ;;  %v1567_v34 = vld [vmem:[%s2059_s4 + $0x10] sm:$0xf] }
  0xa4   : > { %v427_v38 = vcombine.high %v423_v35, %v423_v35  ;;  %v1874_v39 = vpack.c.bf16 %v423_v35, %v423_v35  ;;  %v1876_v40 = vpack.c.bf16 %v424_v36, %v424_v36  ;;  %v433_v42 = vcombine.high %v424_v36, %v424_v36 }
  0xa6   : > { %446 = vrot.lane.b32.xlu0 %v1876_v40, %s1764_s30  ;;  %442 = vrot.lane.b32.xlu1 %v1874_v39, %s1764_s30  ;;  %v430_v41 = vpack.c.bf16 %v427_v38, %v427_v38  ;;  %v435_v43 = vpack.c.bf16 %v433_v42, %v433_v42  ;;  %v553_v56 = vsel %vm458_vm5, %v1874_v39, 0  ;;  %v559_v60 = vsel %vm458_vm5, %v1876_v40, 0 }
  0xaa   : > { %644 = vrot.lane.b32.xlu0 %v1874_v39, %s1766_s11  ;;  %444 = vrot.lane.b32.xlu1 %v430_v41, %s1764_s30 }
  0xae   : > { %648 = vrot.lane.b32.xlu0 %v1876_v40, %s1766_s11  ;;  %448 = vrot.lane.b32.xlu1 %v435_v43, %s1764_s30 }
  0xb2   : > { %754 = vrot.lane.b32.xlu0 %v1874_v39, %s1767_s12  ;;  %646 = vrot.lane.b32.xlu1 %v430_v41, %s1766_s11 }
  0xb6   : > { %758 = vrot.lane.b32.xlu0 %v1876_v40, %s1767_s12  ;;  %650 = vrot.lane.b32.xlu1 %v435_v43, %s1766_s11 }
  0xba   : > { %864 = vrot.lane.b32.xlu0 %v1874_v39, %s1768_s15  ;;  %756 = vrot.lane.b32.xlu1 %v430_v41, %s1767_s12 }
  0xbe   : > { %868 = vrot.lane.b32.xlu0 %v1876_v40, %s1768_s15  ;;  %760 = vrot.lane.b32.xlu1 %v435_v43, %s1767_s12 }
  0xc2   : > { %974 = vrot.lane.b32.xlu0 %v1874_v39, %s1769_s16  ;;  %866 = vrot.lane.b32.xlu1 %v430_v41, %s1768_s15 }
  0xc6   : > { %978 = vrot.lane.b32.xlu0 %v1876_v40, %s1769_s16  ;;  %870 = vrot.lane.b32.xlu1 %v435_v43, %s1768_s15 }
  0xca   : > { %1084 = vrot.lane.b32.xlu0 %v1874_v39, %s1770_s17  ;;  %976 = vrot.lane.b32.xlu1 %v430_v41, %s1769_s16 }
  0xce   : > { %1088 = vrot.lane.b32.xlu0 %v1876_v40, %s1770_s17  ;;  %980 = vrot.lane.b32.xlu1 %v435_v43, %s1769_s16 }
  0xd2   : > { %1194 = vrot.lane.b32.xlu0 %v1874_v39, %s1771_s18  ;;  %1086 = vrot.lane.b32.xlu1 %v430_v41, %s1770_s17 }
  0xd6   : > { %1198 = vrot.lane.b32.xlu0 %v1876_v40, %s1771_s18  ;;  %1090 = vrot.lane.b32.xlu1 %v435_v43, %s1770_s17 }
  0xda   : > { %1304 = vrot.lane.b32.xlu0 %v1874_v39, %s1772_s19  ;;  %1196 = vrot.lane.b32.xlu1 %v430_v41, %s1771_s18 }
  0xde   : > { %1308 = vrot.lane.b32.xlu0 %v1876_v40, %s1772_s19  ;;  %1200 = vrot.lane.b32.xlu1 %v435_v43, %s1771_s18 }
  0xe2   : > { %1306 = vrot.lane.b32.xlu1 %v430_v41, %s1772_s19 }
  0xe6   : > { %1310 = vrot.lane.b32.xlu1 %v435_v43, %s1772_s19 }
 0x118   : > { %v447_v44 = vpop.permute.xlu0 %446  ;;  %v443_v45 = vpop.permute.xlu1 %442 }
 0x11c   : > { %v645_v46 = vpop.permute.xlu0 %644  ;;  %v445_v47 = vpop.permute.xlu1 %444 }
 0x11d   : > { %v452_v48 = vsel %vm450_vm4, %v445_v47, %v447_v44  ;;  %v451_v49 = vsel %vm450_vm4, %v443_v45, %v445_v47  ;;  %v1571_v45 = vld [vmem:[%s2059_s4 + $0x14] sm:$0xf] }
 0x11e   : > { %1553 = vmatprep.subr.msk.bf16.mxu0 %vm458_vm5, %v452_v48  ;;  %v460_v50 = vsel %vm458_vm5, %v451_v49, 0 }
 0x11f   : > { %469 = vmatpush1.bf16.msra.mxu0 %v460_v50 }
 0x120   : > { %v649_v52 = vpop.permute.xlu0 %648  ;;  %1556 = vmatprep.subr.msk.bf16.mxu0 %vm458_vm5, %v430_v41  ;;  %v449_v53 = vpop.permute.xlu1 %448 }
 0x121   : > { %v453_v54 = vsel %vm450_vm4, %v447_v44, %v449_v53 }
 0x122   : > { %1554 = vmatmul.mubr.msk.bf16.vlgmr.msra.gmra.mrb[0].mxu0 %vm454_vm6, %v1552_v51  ;;  %v466_v55 = vsel %vm458_vm5, %v453_v54, 0 }
 0x123   : > { %1610 = vmatpush3.bf16.msra.mxu1 %v466_v55  ;;  %562 = vmatpush1.bf16.msra.mxu0 %v553_v56  ;;  %v1575_v55 = vld [vmem:[%s2059_s4 + $0x18] sm:$0xf] }
 0x124   : > { %v647_v57 = vpop.permute.xlu1 %646  ;;  %1615 = vmatprep.subr.bf16.mxu1 %v1763_v37  ;;  %593 = vmatprep.mubr.bf16.mxu0 %v1761_v2  ;;  %v755_v59 = vpop.permute.xlu0 %754 }
 0x125   : > { %v654_v58 = vsel %vm652_vm7, %v647_v57, %v649_v52  ;;  %v653_v62 = vsel %vm652_vm7, %v645_v46, %v647_v57 }
 0x126   : > { %1612 = vmatmul.mubr.msk.bf16.vlgmr.msra.gmra.mrb[0].mxu1 %vm454_vm6, %v1552_v51  ;;  %1560 = vmatprep.subr.msk.bf16.mxu0 %vm458_vm5, %v654_v58  ;;  %v660_v4 = vsel %vm458_vm5, %v653_v62, 0 }
 0x127   : > { %1616 = vmatpush3.bf16.msra.mxu1 %v559_v60  ;;  %1617 = vmatprep.mubr.msk.bf16.mxu1 %vm1765_vm3, %v1763_v37 }
 0x128   : > { %v651_v61 = vpop.permute.xlu1 %650  ;;  %1621 = vmatprep.subr.bf16.mxu1 %v1763_v37  ;;  %v759_v0 = vpop.permute.xlu0 %758 }
 0x129   : > { %v655_v5 = vsel %vm652_vm7, %v649_v52, %v651_v61 }
 0x12a   : > { %v666_v6 = vsel %vm458_vm5, %v655_v5, 0  ;;  %v1583_v5 = vld [vmem:[%s2059_s4 + $0x20] sm:$0xf] }
 0x12c   : > { %v757_v1 = vpop.permute.xlu1 %756  ;;  %v865_v9 = vpop.permute.xlu0 %864 }
 0x12d   : > { %v764_v3 = vsel %vm762_vm8, %v757_v1, %v759_v0  ;;  %v763_v10 = vsel %vm762_vm8, %v755_v59, %v757_v1 }
 0x12e   : > { %1557 = vmatmul.mubr.msk.bf16.vlgmr.msra.gmra.mrb[0].mxu0 %vm454_vm6, %v432_v63  ;;  %v770_v16 = vsel %vm458_vm5, %v763_v10, 0 }
 0x12f   : > { %669 = vmatpush1.bf16.msra.mxu0 %v660_v4  ;;  %700 = vmatprep.mubr.bf16.mxu0 %v1761_v2 }
 0x130   : > { %1564 = vmatprep.subr.msk.bf16.mxu0 %vm458_vm5, %v764_v3  ;;  %v761_v7 = vpop.permute.xlu1 %760  ;;  %v869_v17 = vpop.permute.xlu0 %868 }
 0x131   : > { %v765_v18 = vsel %vm762_vm8, %v759_v0, %v761_v7 }
 0x132   : > { %1618 = vmatmul.mubr.msk.bf16.vlgmr.msra.gmra.mrb[0].mxu1 %vm454_vm6, %v432_v63  ;;  %v776_v20 = vsel %vm458_vm5, %v765_v18, 0  ;;  %v1579_v63 = vld [vmem:[%s2059_s4 + $0x1c] sm:$0xf] }
 0x133   : > { %1622 = vmatpush3.bf16.msra.mxu1 %v666_v6  ;;  %1623 = vmatprep.mubr.msk.bf16.mxu1 %vm1765_vm3, %v1763_v37 }
 0x134   : > { %1627 = vmatprep.subr.bf16.mxu1 %v1763_v37  ;;  %v867_v15 = vpop.permute.xlu1 %866  ;;  %v975_v22 = vpop.permute.xlu0 %974 }
 0x135   : > { %v874_v19 = vsel %vm872_vm9, %v867_v15, %v869_v17  ;;  %v873_v23 = vsel %vm872_vm9, %v865_v9, %v867_v15 }
 0x136   : > { %v880_v26 = vsel %vm458_vm5, %v873_v23, 0 }
 0x138   : > { %v871_v21 = vpop.permute.xlu1 %870  ;;  %v979_v27 = vpop.permute.xlu0 %978 }
 0x139   : > { %v875_v28 = vsel %vm872_vm9, %v869_v17, %v871_v21 }
 0x13a   : > { %1561 = vmatmul.mubr.msk.bf16.vlgmr.msra.gmra.mrb[0].mxu0 %vm454_vm6, %v1559_v14  ;;  %v886_v30 = vsel %vm458_vm5, %v875_v28, 0 }
 0x13b   : > { %779 = vmatpush1.bf16.msra.mxu0 %v770_v16  ;;  %810 = vmatprep.mubr.bf16.mxu0 %v1761_v2 }
 0x13c   : > { %1568 = vmatprep.subr.msk.bf16.mxu0 %vm458_vm5, %v874_v19  ;;  %v977_v25 = vpop.permute.xlu1 %976  ;;  %v1085_v32 = vpop.permute.xlu0 %1084 }
 0x13d   : > { %v984_v29 = vsel %vm982_vm10, %v977_v25, %v979_v27  ;;  %v983_v33 = vsel %vm982_vm10, %v975_v22, %v977_v25 }
 0x13e   : > { %1624 = vmatmul.mubr.msk.bf16.vlgmr.msra.gmra.mrb[0].mxu1 %vm454_vm6, %v1559_v14  ;;  %v990_v36 = vsel %vm458_vm5, %v983_v33, 0 }
 0x13f   : > { %1628 = vmatpush3.bf16.msra.mxu1 %v776_v20  ;;  %1629 = vmatprep.mubr.msk.bf16.mxu1 %vm1765_vm3, %v1763_v37 }
 0x140   : > { %1633 = vmatprep.subr.bf16.mxu1 %v1763_v37  ;;  %v981_v31 = vpop.permute.xlu1 %980  ;;  %v1089_v38 = vpop.permute.xlu0 %1088 }
 0x141   : > { %v985_v39 = vsel %vm982_vm10, %v979_v27, %v981_v31  ;;  %v1443_v31 = vld [vmem:[#allocation3] sm:$0xff] }
 0x142   : > { %v996_v41 = vsel %vm458_vm5, %v985_v39, 0 }
 0x144   : > { %v1087_v35 = vpop.permute.xlu1 %1086  ;;  %v1195_v43 = vpop.permute.xlu0 %1194 }
 0x145   : > { %v1094_v40 = vsel %vm1092_vm11, %v1087_v35, %v1089_v38  ;;  %v1093_v44 = vsel %vm1092_vm11, %v1085_v32, %v1087_v35 }
 0x146   : > { %1565 = vmatmul.mubr.msk.bf16.vlgmr.msra.gmra.mrb[0].mxu0 %vm454_vm6, %v1563_v24  ;;  %v1100_v47 = vsel %vm458_vm5, %v1093_v44, 0  ;;  %v1469_v44 = vld [vmem:[%s2060_s5] sm:$0xff] (!%p1587_p5) }
 0x147   : > { %889 = vmatpush1.bf16.msra.mxu0 %v880_v26  ;;  %920 = vmatprep.mubr.bf16.mxu0 %v1761_v2 }
 0x148   : > { %1572 = vmatprep.subr.msk.bf16.mxu0 %vm458_vm5, %v984_v29  ;;  %v1091_v42 = vpop.permute.xlu1 %1090  ;;  %v1199_v48 = vpop.permute.xlu0 %1198 }
 0x149   : > { %v1095_v49 = vsel %vm1092_vm11, %v1089_v38, %v1091_v42 }
 0x14a   : > { %1630 = vmatmul.mubr.msk.bf16.vlgmr.msra.gmra.mrb[0].mxu1 %vm454_vm6, %v1563_v24  ;;  %v1106_v51 = vsel %vm458_vm5, %v1095_v49, 0 }
 0x14b   : > { %1634 = vmatpush3.bf16.msra.mxu1 %v886_v30  ;;  %1635 = vmatprep.mubr.msk.bf16.mxu1 %vm1765_vm3, %v1763_v37 }
 0x14c   : > { %1639 = vmatprep.subr.bf16.mxu1 %v1763_v37  ;;  %v1197_v46 = vpop.permute.xlu1 %1196  ;;  %v1305_v53 = vpop.permute.xlu0 %1304 }
 0x14d   : > { %v1204_v50 = vsel %vm1202_vm12, %v1197_v46, %v1199_v48  ;;  %v1203_v54 = vsel %vm1202_vm12, %v1195_v43, %v1197_v46 }
 0x14e   : > { %v1210_v57 = vsel %vm458_vm5, %v1203_v54, 0 }
 0x150   : > { %v1201_v52 = vpop.permute.xlu1 %1200  ;;  %v1309_v58 = vpop.permute.xlu0 %1308 }
 0x151   : > { %v1205_v59 = vsel %vm1202_vm12, %v1199_v48, %v1201_v52 }
 0x152   : > { %1569 = vmatmul.mubr.msk.bf16.vlgmr.msra.gmra.mrb[0].mxu0 %vm454_vm6, %v1567_v34  ;;  %v1216_v61 = vsel %vm458_vm5, %v1205_v59, 0 }
 0x153   : > { %999 = vmatpush1.bf16.msra.mxu0 %v990_v36  ;;  %1030 = vmatprep.mubr.bf16.mxu0 %v1761_v2 }
 0x154   : > { %1576 = vmatprep.subr.msk.bf16.mxu0 %vm458_vm5, %v1094_v40  ;;  %v1307_v56 = vpop.permute.xlu1 %1306 }
 0x155   : > { %v1314_v60 = vsel %vm1312_vm13, %v1307_v56, %v1309_v58  ;;  %v1313_v62 = vsel %vm1312_vm13, %v1305_v53, %v1307_v56 }
 0x156   : > { %1636 = vmatmul.mubr.msk.bf16.vlgmr.msra.gmra.mrb[0].mxu1 %vm454_vm6, %v1567_v34  ;;  %v1320_v1 = vsel %vm458_vm5, %v1313_v62, 0 }
 0x157   : > { %1640 = vmatpush3.bf16.msra.mxu1 %v996_v41  ;;  %1641 = vmatprep.mubr.msk.bf16.mxu1 %vm1765_vm3, %v1763_v37 }
 0x158   : > { %1645 = vmatprep.subr.bf16.mxu1 %v1763_v37  ;;  %v1311_v0 = vpop.permute.xlu1 %1310 }
 0x159   : > { %v1315_v3 = vsel %vm1312_vm13, %v1309_v58, %v1311_v0 }
 0x15a   : > { %v1326_v4 = vsel %vm458_vm5, %v1315_v3, 0 }
 0x15e   : > { %1573 = vmatmul.mubr.msk.bf16.vlgmr.msra.gmra.mrb[0].mxu0 %vm454_vm6, %v1571_v45 }
 0x15f   : > { %1109 = vmatpush1.bf16.msra.mxu0 %v1100_v47  ;;  %1140 = vmatprep.mubr.bf16.mxu0 %v1761_v2  ;;  %v1472_v47 = vld [vmem:[%s2061_s6] sm:$0xff] (!%p1587_p5) }
 0x160   : > { %1580 = vmatprep.subr.msk.bf16.mxu0 %vm458_vm5, %v1204_v50 }
 0x162   : > { %1642 = vmatmul.mubr.msk.bf16.vlgmr.msra.gmra.mrb[0].mxu1 %vm454_vm6, %v1571_v45 }
 0x163   : > { %1646 = vmatpush3.bf16.msra.mxu1 %v1106_v51  ;;  %1647 = vmatprep.mubr.msk.bf16.mxu1 %vm1765_vm3, %v1763_v37 }
 0x164   : > { %1651 = vmatprep.subr.bf16.mxu1 %v1763_v37 }
 0x16a   : > { %1577 = vmatmul.mubr.msk.bf16.vlgmr.msra.gmra.mrb[0].mxu0 %vm454_vm6, %v1575_v55 }
 0x16b   : > { %1219 = vmatpush1.bf16.msra.mxu0 %v1210_v57  ;;  %1250 = vmatprep.mubr.bf16.mxu0 %v1761_v2 }
 0x16c   : > { %1584 = vmatprep.subr.msk.bf16.mxu0 %vm458_vm5, %v1314_v60 }
 0x16e   : > { %1648 = vmatmul.mubr.msk.bf16.vlgmr.msra.gmra.mrb[0].mxu1 %vm454_vm6, %v1575_v55 }
 0x16f   : > { %1652 = vmatpush3.bf16.msra.mxu1 %v1216_v61  ;;  %1653 = vmatprep.mubr.msk.bf16.mxu1 %vm1765_vm3, %v1763_v37 }
 0x170   : > { %1657 = vmatprep.subr.bf16.mxu1 %v1763_v37 }
 0x176   : > { %1581 = vmatmul.mubr.msk.bf16.vlgmr.msra.gmra.mrb[0].mxu0 %vm454_vm6, %v1579_v63 }
 0x177   : > { %1329 = vmatpush1.bf16.msra.mxu0 %v1320_v1  ;;  %1360 = vmatprep.mubr.bf16.mxu0 %v1761_v2  ;;  %v1415_v2 = vld [vmem:[%s2062_s7] sm:$0x7] }
 0x178   : > { %v1421_v6 = vrot.slane %v1415_v2, %v405_v11  ;;  %v1425_v7 = vrot.slane %v1415_v2, %v409_v12  ;;  %v1429_v15 = vrot.slane %v1415_v2, %v413_v13  ;;  %v1416_v13 = vld [vmem:[#allocation2] sm:$0xff] }
 0x17a   : > { %1654 = vmatmul.mubr.msk.bf16.vlgmr.msra.gmra.mrb[0].mxu1 %vm454_vm6, %v1579_v63 }
 0x17b   : > { %1658 = vmatpush3.bf16.msra.mxu1 %v1326_v4  ;;  %1659 = vmatprep.mubr.msk.bf16.mxu1 %vm1765_vm3, %v1763_v37 }
 0x182   : > { %1585 = vmatmul.mubr.msk.bf16.vlgmr.msra.gmra.mrb[0].mxu0 %vm454_vm6, %v1583_v5 }
 0x186   : > { %1660 = vmatmul.mubr.msk.bf16.vlgmr.msra.gmra.mrb[0].mxu1 %vm454_vm6, %v1583_v5 }
 0x255   : > { %v1362_v37 = vpop.f32.mrb[0].mxu0 }
 0x256   : > { %1412 = vst [vmem:[%s1846_s23] sm:$0xff] %v1362_v37  ;;  %v1433_v9 = vmul.f32 %v1421_v6, %v1362_v37  ;;  %v1444_v10 = vmul.f32 %v1362_v37, %v1362_v37  ;;  %v1364_v14 = vpop.f32.mrb[1].mxu0 }
 0x257   : > { %1413 = vst [vmem:[%s1846_s23 + $0x8] sm:$0xff] %v1364_v14  ;;  %v1434_v16 = vmul.f32 %v1425_v7, %v1364_v14  ;;  %v1445_v17 = vmul.f32 %v1364_v14, %v1364_v14  ;;  %v1366_v18 = vpop.f32.mrb[2].mxu0 }
 0x258   : > { %v1367_v19 = vpop.f32.mrb[3].mxu0  ;;  %v1447_v20 = vmul.f32 %v1444_v10, %v1421_v6 }
 0x259   : > { %v1403_v21 = vpop.f32.mrb[0].mxu1  ;;  %v1436_v11 = vadd.f32 %v1434_v16, %v1433_v9  ;;  %v1448_v22 = vmul.f32 %v1445_v17, %v1425_v7 }
 0x25a   : > { %1414 = vst [vmem:[%s1846_s23 + $0x10] sm:$0xff] %v1403_v21  ;;  %v1446_v12 = vmul.f32 %v1403_v21, %v1403_v21  ;;  %v1661_v23 = vpop.f32.mrb[1].mxu1  ;;  %v1435_v24 = vmul.f32 %v1429_v15, %v1403_v21 }
 0x25b   : > { %v1406_v25 = vpop.f32.mrb[2].mxu1  ;;  %v1450_v26 = vadd.f32 %v1448_v22, %v1447_v20 }
 0x25c   : > { %v1662_v27 = vpop.f32.mrb[3].mxu1  ;;  %v1437_v28 = vadd.f32 %v1436_v11, %v1435_v24  ;;  %v1449_v29 = vmul.f32 %v1446_v12, %v1429_v15 }
 0x25e   : > { %1438 = vadd.xlane.f32.xlu0 %v1437_v28  ;;  %v1451_v8 = vadd.f32 %v1450_v26, %v1449_v29 }
 0x260   : > { %1452 = vadd.xlane.f32.xlu1 %v1451_v8 }
 0x2ea   : > { %1459 = sbr.rel (%p1587_p5) target bundleno = 786 (0x312), region = 60 }
 0x2eb   : > { %v1439_v30 = vpop.xlane.xlu0 %1438 }
 0x2ec   : > { %v1440_v32 = vadd.f32 %v1439_v30, %v1416_v13 }
 0x2ed   : > { %v1453_v33 = vpop.xlane.xlu1 %1452 }
 0x2ee   : > { %1442 = vst.msk [vmem:[#allocation2] sm:$0xff] %vm1441_vm14, %v1440_v32  ;;  %v1454_v34 = vadd.f32 %v1453_v33, %v1443_v31 }
 0x2f0   : > { %1455 = vst.msk [vmem:[#allocation3] sm:$0xff] %vm1441_vm14, %v1454_v34 }
 0x2f5   : > { %v1460_v35 = vld [vmem:[#allocation2] sm:$0xff] }
 0x2f6   : > { %v1461_v38 = vmul.f32 0.001953125, %v1460_v35 }
 0x2f7   : > { %v1462_v36 = vld [vmem:[#allocation3] sm:$0xff] }
 0x2f8   : > { %v1463_v39 = vmul.f32 0.001953125, %v1462_v36  ;;  %v1464_v40 = vmul.f32 %v1461_v38, %v1461_v38 }
 0x2fa   : > { %v1465_v41 = vsub.f32 %v1463_v39, %v1464_v40 }
 0x2fc   : > { %v1466_v42 = vmax.f32 %v1465_v41, 0.0 }
 0x2fe   : > { %v1467_v43 = vadd.f32 1e-05, %v1466_v42 }
 0x300   : > { %1750 = vrsqrt.f32 %v1467_v43 }
 0x30a   : > { %v1751_v45 = vpop.eup %1750 }
 0x30b   : > { %v1470_v46 = vmul.f32 %v1751_v45, %v1469_v44 }
 0x30d   : > { %1471 = vst.msk [vmem:[%s2064_s9] sm:$0xff] %vm1441_vm14, %v1470_v46  ;;  %v1473_v48 = vmul.f32 %v1470_v46, %v1461_v38 }
 0x30f   : > { %v1474_v49 = vsub.f32 %v1472_v47, %v1473_v48 }
 0x311   : > { %1475 = vst.msk [vmem:[%s2065_s10] sm:$0xff] %vm1441_vm14, %v1474_v49 }
 0x312 PF: > { %s21_s13 = sadd.s32 1, %s1758_s13  }
 0x313   : > { %p18_p6 = scmp.ge.s32.totalorder %s21_s13, 4  }
 0x315   :  { %20 = sbr.rel (!%p18_p6) target bundleno = 1 (0x1), region = 114 }

</bundles_post_ra>
